<compile_context>
chip_gen: v6e
topology: v6e:2x2x1
jax: 0.10.0
libtpu: 0.0.40
codegen_flags: <defaults>
</compile_context>

<pallas_src>
import jax
import jax.numpy as jnp
from jax.experimental import pallas as pl
from jax.experimental.pallas import tpu as pltpu

CLASS_NUM = 10     # `class_num` is an undefined global in the reference module.
EPS = 1e-5


# ----------------------------------------------------------------------------
# Kernel 1: fused  conv1(k=3,pad=1)+BN+ReLU  ->  conv2(k=3,pad=1)+BN+ReLU
# One batch element per grid step; h1 stays in VMEM scratch.
# ----------------------------------------------------------------------------
def _conv_stack_kernel(xw_ref, w1_ref, s1_ref, t1_ref, w2_ref, s2_ref, t2_ref,
                       o_ref, h1_ref):
    # xw_ref : (1, L, 6)     im2col of conv1 input (taps k=0,1,2 x Cin=2)
    # w1_ref : (6, C1)       conv1 weight, rows ordered (k, cin)
    # s1/t1  : (1, C1)       folded conv-bias + BatchNorm affine
    # w2_ref : (3, C1, C2)   conv2 weight per tap
    # s2/t2  : (1, C2)
    # o_ref  : (1, L, C2)
    # h1_ref : (L+2, C1)     VMEM scratch; rows 0 and L+1 stay zero (padding)
    L = o_ref.shape[1]

    h1 = jnp.dot(xw_ref[0], w1_ref[...], preferred_element_type=jnp.float32)
    h1 = jnp.maximum(h1 * s1_ref[...] + t1_ref[...], 0.0)

    h1_ref[...] = jnp.zeros_like(h1_ref)
    h1_ref[1:L + 1, :] = h1

    acc = jnp.dot(h1_ref[0:L, :], w2_ref[0], preferred_element_type=jnp.float32)
    acc += jnp.dot(h1_ref[1:L + 1, :], w2_ref[1], preferred_element_type=jnp.float32)
    acc += jnp.dot(h1_ref[2:L + 2, :], w2_ref[2], preferred_element_type=jnp.float32)
    o_ref[0] = jnp.maximum(acc * s2_ref[...] + t2_ref[...], 0.0)


def conv_stack(x_win, w1m, s1, t1, w2k, s2, t2):
    B, L, KC = x_win.shape
    _, C1 = w1m.shape
    _, _, C2 = w2k.shape
    return pl.pallas_call(
        _conv_stack_kernel,
        out_shape=jax.ShapeDtypeStruct((B, L, C2), jnp.float32),
        grid_spec=pltpu.PrefetchScalarGridSpec(
            num_scalar_prefetch=0,
            grid=(B,),
            in_specs=[
                pl.BlockSpec((1, L, KC), lambda b: (b, 0, 0)),
                pl.BlockSpec((KC, C1), lambda b: (0, 0)),
                pl.BlockSpec((1, C1), lambda b: (0, 0)),
                pl.BlockSpec((1, C1), lambda b: (0, 0)),
                pl.BlockSpec((3, C1, C2), lambda b: (0, 0, 0)),
                pl.BlockSpec((1, C2), lambda b: (0, 0)),
                pl.BlockSpec((1, C2), lambda b: (0, 0)),
            ],
            out_specs=pl.BlockSpec((1, L, C2), lambda b: (b, 0, 0)),
            scratch_shapes=[pltpu.VMEM((L + 2, C1), jnp.float32)],
        ),
        compiler_params=pltpu.CompilerParams(dimension_semantics=("parallel",)),
    )(x_win, w1m, s1, t1, w2k, s2, t2)


# ----------------------------------------------------------------------------
# Kernel 2: fused  fc1(K-tiled, bf16 weight stream)+BN+ReLU  ->  fc2+ReLU
# ----------------------------------------------------------------------------
def _fc_fused_kernel(x_ref, w3_ref, s3_ref, t3_ref, w4_ref, b4_ref,
                     o_ref, acc_ref):
    k = pl.program_id(0)

    @pl.when(k == 0)
    def _():
        acc_ref[...] = jnp.zeros_like(acc_ref)

    acc_ref[...] += jnp.dot(x_ref[...].astype(jnp.bfloat16), w3_ref[...],
                            preferred_element_type=jnp.float32)

    @pl.when(k == pl.num_programs(0) - 1)
    def _():
        h3 = jnp.maximum(acc_ref[...] * s3_ref[...] + t3_ref[...], 0.0)
        # TODO(synk): Dropout(p=0.6) identity here (eval mode).
        y = jnp.dot(h3, w4_ref[...], preferred_element_type=jnp.float32)
        o_ref[...] = jnp.maximum(y + b4_ref[...], 0.0)


def _pick_tk(K, cap=8192):
    # Largest 128-multiple divisor of K not exceeding `cap` (keeps the
    # double-buffered bf16 w3 tiles <= ~8 MiB: safe on v5e/v6e/v7x VMEM).
    if K <= cap:
        return K
    for tk in range(cap - cap % 128, 0, -128):
        if K % tk == 0:
            return tk
    return K


def fc_stack(x_flat, w3_bf16, s3, t3, w4, b4, *, tk):
    B, K = x_flat.shape
    _, H = w3_bf16.shape
    _, C = w4.shape
    assert K % tk == 0
    return pl.pallas_call(
        _fc_fused_kernel,
        out_shape=jax.ShapeDtypeStruct((B, C), jnp.float32),
        grid_spec=pltpu.PrefetchScalarGridSpec(
            num_scalar_prefetch=0,
            grid=(K // tk,),
            in_specs=[
                pl.BlockSpec((B, tk), lambda k: (0, k)),
                pl.BlockSpec((tk, H), lambda k: (k, 0)),
                pl.BlockSpec((1, H), lambda k: (0, 0)),
                pl.BlockSpec((1, H), lambda k: (0, 0)),
                pl.BlockSpec((H, C), lambda k: (0, 0)),
                pl.BlockSpec((1, C), lambda k: (0, 0)),
            ],
            out_specs=pl.BlockSpec((B, C), lambda k: (0, 0)),
            scratch_shapes=[pltpu.VMEM((B, H), jnp.float32)],
        ),
        compiler_params=pltpu.CompilerParams(
            dimension_semantics=("arbitrary",),
            vmem_limit_bytes=32 * 1024 * 1024),
    )(x_flat, w3_bf16, s3, t3, w4, b4)


# ----------------------------------------------------------------------------
# Parameter construction (deterministic, synthetic)
# ----------------------------------------------------------------------------
def make_params(key, L):
    ks = jax.random.split(key, 14)

    def w(k, shape, fan_in):
        return jax.random.normal(k, shape, jnp.float32) / jnp.sqrt(fan_in)

    p = {}
    p["w1"] = w(ks[0], (256, 2, 3), 2 * 3)                  # PyTorch (Cout,Cin,K)
    p["b1"] = w(ks[1], (256,), 2 * 3)
    p["g1"] = 1.0 + 0.1 * jax.random.normal(ks[2], (256,), jnp.float32)
    p["be1"] = 0.1 * jax.random.normal(ks[3], (256,), jnp.float32)
    p["w2"] = w(ks[4], (80, 256, 3), 256 * 3)
    p["b2"] = w(ks[5], (80,), 256 * 3)
    p["g2"] = 1.0 + 0.1 * jax.random.normal(ks[6], (80,), jnp.float32)
    p["be2"] = 0.1 * jax.random.normal(ks[7], (80,), jnp.float32)
    p["w3"] = w(ks[8], (256, 80 * L), 80 * L)
    p["b3"] = w(ks[9], (256,), 80 * L)
    p["g3"] = 1.0 + 0.1 * jax.random.normal(ks[10], (256,), jnp.float32)
    p["be3"] = 0.1 * jax.random.normal(ks[11], (256,), jnp.float32)
    p["w4"] = w(ks[12], (CLASS_NUM, 256), 256)
    p["b4"] = w(ks[13], (CLASS_NUM,), 256)
    return p


def _affine_fold(bias, gamma, beta):
    # eval-mode BN (mean=0, var=1) folded together with the preceding bias:
    #   (y + b) * g/sqrt(1+eps) + beta  ==  y*scale + (b*scale + beta)
    scale = gamma / jnp.sqrt(1.0 + EPS)
    shift = bias * scale + beta
    return scale.reshape(1, -1), shift.reshape(1, -1)


# ----------------------------------------------------------------------------
# Full forward pass
# ----------------------------------------------------------------------------
def discriminator_forward(x_ncl, p):
    B, Cin, L = x_ncl.shape
    C1 = p["w1"].shape[0]          # 256
    C2 = p["w2"].shape[0]          # 80

    # One-time parameter preprocessing (layout folding).
    s1, t1 = _affine_fold(p["b1"], p["g1"], p["be1"])
    s2, t2 = _affine_fold(p["b2"], p["g2"], p["be2"])
    s3, t3 = _affine_fold(p["b3"], p["g3"], p["be3"])

    w1m = jnp.transpose(p["w1"], (2, 1, 0)).reshape(3 * Cin, C1)   # (6, 256)
    w2k = jnp.transpose(p["w2"], (2, 1, 0))                        # (3, 256, 80)
    # fc1 weight: permute columns from PyTorch's channel-major flatten (c*L+l)
    # to l-major (l*80+c) so it consumes h2's natural (B, L*80) layout, and
    # stream it as bf16 (only large tensor -> halves dominant HBM traffic).
    w3p = (jnp.transpose(p["w3"].reshape(256, C2, L), (2, 1, 0))
           .reshape(L * C2, 256).astype(jnp.bfloat16))
    w4t = p["w4"].T                                                # (256, class_num)

    # Tiny im2col for conv1 (Cin=2): one (L,6)@(6,256) dot instead of 3x K=2 dots.
    x_blc = jnp.transpose(x_ncl, (0, 2, 1))                        # (B, L, 2)
    x_pad = jnp.pad(x_blc, ((0, 0), (1, 1), (0, 0)))               # (B, L+2, 2)
    x_win = jnp.concatenate(
        [x_pad[:, 0:L], x_pad[:, 1:L + 1], x_pad[:, 2:L + 2]], axis=-1)  # (B,L,6)

    h2 = conv_stack(x_win, w1m, s1, t1, w2k, s2, t2)               # (B, L, 80)
    flat = h2.reshape(B, L * C2)                                   # (B, L*80)

    tk = _pick_tk(L * C2)
    return fc_stack(flat, w3p, s3, t3, w4t, p["b4"].reshape(1, -1), tk=tk)


# ----------------------------------------------------------------------------
# Pure-JAX reference (PyTorch semantics, f32) for the correctness check
# ----------------------------------------------------------------------------
def reference_forward(x_ncl, p):
    def conv_bn_relu_ref(x, wt, b, g, be):
        B, Ci, L = x.shape
        xp = jnp.pad(x, ((0, 0), (0, 0), (1, 1)))
        win = jnp.stack([xp[:, :, k:k + L] for k in range(3)], axis=0)  # (3,B,Ci,L)
        y = jnp.einsum("kbil,oik->bol", win, wt) + b[None, :, None]
        s = g / jnp.sqrt(1.0 + EPS)
        return jnp.maximum(y * s[None, :, None] + be[None, :, None], 0.0)

    h1 = conv_bn_relu_ref(x_ncl, p["w1"], p["b1"], p["g1"], p["be1"])
    h2 = conv_bn_relu_ref(h1, p["w2"], p["b2"], p["g2"], p["be2"])
    flat = h2.reshape(h2.shape[0], -1)          # PyTorch channel-major flatten
    s3 = p["g3"] / jnp.sqrt(1.0 + EPS)
    h3 = jnp.maximum((flat @ p["w3"].T + p["b3"]) * s3 + p["be3"], 0.0)
    return jnp.maximum(h3 @ p["w4"].T + p["b4"], 0.0)


if __name__ == "__main__":
    B, L = 2, 128           # small example; original module implies L = 1024
    key = jax.random.PRNGKey(0)
    kx, kp = jax.random.split(key)
    x = jax.random.normal(kx, (B, 2, L), jnp.float32)     # PyTorch NCL input
    params = make_params(kp, L)

    out = jax.block_until_ready(discriminator_forward(x, params))
    ref = jax.block_until_ready(reference_forward(x, params))

    assert out.shape == (B, CLASS_NUM), out.shape
    err = float(jnp.max(jnp.abs(out - ref)))
    assert jnp.allclose(out, ref, rtol=2e-2, atol=2e-2), f"max abs diff {err}"
    print("KERNEL_OK")
</pallas_src>

<mosaic_0001>
module attributes {stable_mosaic.version = 11 : i64} {
  func.func @_conv_stack_kernel(%arg0: i32, %arg1: memref<1x128x6xf32, #tpu.memory_space<vmem>>, %arg2: memref<6x256xf32, #tpu.memory_space<vmem>>, %arg3: memref<1x256xf32, #tpu.memory_space<vmem>>, %arg4: memref<1x256xf32, #tpu.memory_space<vmem>>, %arg5: memref<3x256x80xf32, #tpu.memory_space<vmem>>, %arg6: memref<1x80xf32, #tpu.memory_space<vmem>>, %arg7: memref<1x80xf32, #tpu.memory_space<vmem>>, %arg8: memref<1x128x80xf32, #tpu.memory_space<vmem>>, %arg9: memref<130x256xf32, #tpu.memory_space<vmem>>) attributes {dimension_semantics = [#tpu.dimension_semantics<parallel>], iteration_bounds = array<i64: 2>, scalar_prefetch = 0 : i64, scratch_operands = 1 : i64, tpu.core_type = #tpu.core_type<tc>, window_params = [{transform_indices = @transform_0, window_bounds = array<i64: 1, 128, 6>}, {pipeline_mode = #tpu.pipeline_mode<synchronous>, transform_indices = @transform_1, window_bounds = array<i64: 6, 256>}, {pipeline_mode = #tpu.pipeline_mode<synchronous>, transform_indices = @transform_2, window_bounds = array<i64: 1, 256>}, {pipeline_mode = #tpu.pipeline_mode<synchronous>, transform_indices = @transform_3, window_bounds = array<i64: 1, 256>}, {pipeline_mode = #tpu.pipeline_mode<synchronous>, transform_indices = @transform_4, window_bounds = array<i64: 3, 256, 80>}, {pipeline_mode = #tpu.pipeline_mode<synchronous>, transform_indices = @transform_5, window_bounds = array<i64: 1, 80>}, {pipeline_mode = #tpu.pipeline_mode<synchronous>, transform_indices = @transform_6, window_bounds = array<i64: 1, 80>}, {transform_indices = @transform_7, window_bounds = array<i64: 1, 128, 80>}]} {
    %c0 = arith.constant 0 : index
    %c0_0 = arith.constant 0 : index
    %c0_1 = arith.constant 0 : index
    %0 = vector.load %arg1[%c0, %c0_0, %c0_1] : memref<1x128x6xf32, #tpu.memory_space<vmem>>, vector<1x128x6xf32>
    %1 = vector.shape_cast %0 : vector<1x128x6xf32> to vector<128x6xf32>
    %c0_2 = arith.constant 0 : index
    %c0_3 = arith.constant 0 : index
    %2 = vector.load %arg2[%c0_2, %c0_3] : memref<6x256xf32, #tpu.memory_space<vmem>>, vector<6x256xf32>
    %cst = arith.constant dense<0.000000e+00> : vector<128x256xf32>
    %3 = tpu.matmul %1, %2, %cst {dimension_numbers = #tpu.dot_dimension_numbers<[1], [0], [0], [1], [0, 0, 1, 1], [], []>} : vector<128x6xf32>, vector<6x256xf32>, vector<128x256xf32> -> vector<128x256xf32>
    %c0_4 = arith.constant 0 : index
    %c0_5 = arith.constant 0 : index
    %4 = vector.load %arg3[%c0_4, %c0_5] : memref<1x256xf32, #tpu.memory_space<vmem>>, vector<1x256xf32>
    %5 = vector.broadcast %4 : vector<1x256xf32> to vector<128x256xf32>
    %6 = arith.mulf %3, %5 : vector<128x256xf32>
    %c0_6 = arith.constant 0 : index
    %c0_7 = arith.constant 0 : index
    %7 = vector.load %arg4[%c0_6, %c0_7] : memref<1x256xf32, #tpu.memory_space<vmem>>, vector<1x256xf32>
    %8 = vector.broadcast %7 : vector<1x256xf32> to vector<128x256xf32>
    %9 = arith.addf %6, %8 : vector<128x256xf32>
    %cst_8 = arith.constant 0.000000e+00 : f32
    %10 = vector.broadcast %cst_8 : f32 to vector<128x256xf32>
    %11 = arith.maximumf %9, %10 : vector<128x256xf32>
    %cst_9 = arith.constant 0.000000e+00 : f32
    %12 = vector.broadcast %cst_9 : f32 to vector<130x256xf32>
    %c0_10 = arith.constant 0 : index
    %c0_11 = arith.constant 0 : index
    %13 = vector.load %arg9[%c0_10, %c0_11] : memref<130x256xf32, #tpu.memory_space<vmem>>, vector<130x256xf32>
    tpu.vector_store %arg9[%c0_10, %c0_11], %12 {strides = array<i32>} : memref<130x256xf32, #tpu.memory_space<vmem>>, vector<130x256xf32>,
    %c1 = arith.constant 1 : index
    %c0_12 = arith.constant 0 : index
    %14 = vector.load %arg9[%c1, %c0_12] : memref<130x256xf32, #tpu.memory_space<vmem>>, vector<128x256xf32>
    tpu.vector_store %arg9[%c1, %c0_12], %11 {strides = array<i32>} : memref<130x256xf32, #tpu.memory_space<vmem>>, vector<128x256xf32>,
    %c0_13 = arith.constant 0 : index
    %c0_14 = arith.constant 0 : index
    %15 = vector.load %arg9[%c0_13, %c0_14] : memref<130x256xf32, #tpu.memory_space<vmem>>, vector<128x256xf32>
    %c0_15 = arith.constant 0 : index
    %c0_16 = arith.constant 0 : index
    %c0_17 = arith.constant 0 : index
    %16 = vector.load %arg5[%c0_15, %c0_16, %c0_17] : memref<3x256x80xf32, #tpu.memory_space<vmem>>, vector<1x256x80xf32>
    %17 = vector.shape_cast %16 : vector<1x256x80xf32> to vector<256x80xf32>
    %cst_18 = arith.constant dense<0.000000e+00> : vector<128x80xf32>
    %18 = tpu.matmul %15, %17, %cst_18 {dimension_numbers = #tpu.dot_dimension_numbers<[1], [0], [0], [1], [0, 0, 1, 1], [], []>} : vector<128x256xf32>, vector<256x80xf32>, vector<128x80xf32> -> vector<128x80xf32>
    %c1_19 = arith.constant 1 : index
    %c0_20 = arith.constant 0 : index
    %19 = vector.load %arg9[%c1_19, %c0_20] : memref<130x256xf32, #tpu.memory_space<vmem>>, vector<128x256xf32>
    %c1_21 = arith.constant 1 : index
    %c0_22 = arith.constant 0 : index
    %c0_23 = arith.constant 0 : index
    %20 = vector.load %arg5[%c1_21, %c0_22, %c0_23] : memref<3x256x80xf32, #tpu.memory_space<vmem>>, vector<1x256x80xf32>
    %21 = vector.shape_cast %20 : vector<1x256x80xf32> to vector<256x80xf32>
    %cst_24 = arith.constant dense<0.000000e+00> : vector<128x80xf32>
    %22 = tpu.matmul %19, %21, %cst_24 {dimension_numbers = #tpu.dot_dimension_numbers<[1], [0], [0], [1], [0, 0, 1, 1], [], []>} : vector<128x256xf32>, vector<256x80xf32>, vector<128x80xf32> -> vector<128x80xf32>
    %23 = arith.addf %18, %22 : vector<128x80xf32>
    %c2 = arith.constant 2 : index
    %c0_25 = arith.constant 0 : index
    %24 = vector.load %arg9[%c2, %c0_25] : memref<130x256xf32, #tpu.memory_space<vmem>>, vector<128x256xf32>
    %c2_26 = arith.constant 2 : index
    %c0_27 = arith.constant 0 : index
    %c0_28 = arith.constant 0 : index
    %25 = vector.load %arg5[%c2_26, %c0_27, %c0_28] : memref<3x256x80xf32, #tpu.memory_space<vmem>>, vector<1x256x80xf32>
    %26 = vector.shape_cast %25 : vector<1x256x80xf32> to vector<256x80xf32>
    %cst_29 = arith.constant dense<0.000000e+00> : vector<128x80xf32>
    %27 = tpu.matmul %24, %26, %cst_29 {dimension_numbers = #tpu.dot_dimension_numbers<[1], [0], [0], [1], [0, 0, 1, 1], [], []>} : vector<128x256xf32>, vector<256x80xf32>, vector<128x80xf32> -> vector<128x80xf32>
    %28 = arith.addf %23, %27 : vector<128x80xf32>
    %c0_30 = arith.constant 0 : index
    %c0_31 = arith.constant 0 : index
    %29 = vector.load %arg6[%c0_30, %c0_31] : memref<1x80xf32, #tpu.memory_space<vmem>>, vector<1x80xf32>
    %30 = vector.broadcast %29 : vector<1x80xf32> to vector<128x80xf32>
    %31 = arith.mulf %28, %30 : vector<128x80xf32>
    %c0_32 = arith.constant 0 : index
    %c0_33 = arith.constant 0 : index
    %32 = vector.load %arg7[%c0_32, %c0_33] : memref<1x80xf32, #tpu.memory_space<vmem>>, vector<1x80xf32>
    %33 = vector.broadcast %32 : vector<1x80xf32> to vector<128x80xf32>
    %34 = arith.addf %31, %33 : vector<128x80xf32>
    %cst_34 = arith.constant 0.000000e+00 : f32
    %35 = vector.broadcast %cst_34 : f32 to vector<128x80xf32>
    %36 = arith.maximumf %34, %35 : vector<128x80xf32>
    %c0_35 = arith.constant 0 : index
    %c0_36 = arith.constant 0 : index
    %c0_37 = arith.constant 0 : index
    %37 = vector.load %arg8[%c0_35, %c0_36, %c0_37] : memref<1x128x80xf32, #tpu.memory_space<vmem>>, vector<1x128x80xf32>
    %38 = vector.shape_cast %37 : vector<1x128x80xf32> to vector<128x80xf32>
    %39 = vector.shape_cast %36 : vector<128x80xf32> to vector<1x128x80xf32>
    tpu.vector_store %arg8[%c0_35, %c0_36, %c0_37], %39 {strides = array<i32>} : memref<1x128x80xf32, #tpu.memory_space<vmem>>, vector<1x128x80xf32>,
    return
  }
  func.func @transform_0(%arg0: i32) -> (i32, i32, i32) {
    %c0_i32 = arith.constant 0 : i32
    %c0_i32_0 = arith.constant 0 : i32
    %c0_i32_1 = arith.constant 0 : i32
    return %arg0, %c0_i32, %c0_i32_0 : i32, i32, i32
  }
  func.func @transform_1(%arg0: i32) -> (i32, i32) {
    %c0_i32 = arith.constant 0 : i32
    %c0_i32_0 = arith.constant 0 : i32
    %c0_i32_1 = arith.constant 0 : i32
    return %c0_i32, %c0_i32_0 : i32, i32
  }
  func.func @transform_2(%arg0: i32) -> (i32, i32) {
    %c0_i32 = arith.constant 0 : i32
    %c0_i32_0 = arith.constant 0 : i32
    %c0_i32_1 = arith.constant 0 : i32
    return %c0_i32, %c0_i32_0 : i32, i32
  }
  func.func @transform_3(%arg0: i32) -> (i32, i32) {
    %c0_i32 = arith.constant 0 : i32
    %c0_i32_0 = arith.constant 0 : i32
    %c0_i32_1 = arith.constant 0 : i32
    return %c0_i32, %c0_i32_0 : i32, i32
  }
  func.func @transform_4(%arg0: i32) -> (i32, i32, i32) {
    %c0_i32 = arith.constant 0 : i32
    %c0_i32_0 = arith.constant 0 : i32
    %c0_i32_1 = arith.constant 0 : i32
    %c0_i32_2 = arith.constant 0 : i32
    return %c0_i32, %c0_i32_0, %c0_i32_1 : i32, i32, i32
  }
  func.func @transform_5(%arg0: i32) -> (i32, i32) {
    %c0_i32 = arith.constant 0 : i32
    %c0_i32_0 = arith.constant 0 : i32
    %c0_i32_1 = arith.constant 0 : i32
    return %c0_i32, %c0_i32_0 : i32, i32
  }
  func.func @transform_6(%arg0: i32) -> (i32, i32) {
    %c0_i32 = arith.constant 0 : i32
    %c0_i32_0 = arith.constant 0 : i32
    %c0_i32_1 = arith.constant 0 : i32
    return %c0_i32, %c0_i32_0 : i32, i32
  }
  func.func @transform_7(%arg0: i32) -> (i32, i32, i32) {
    %c0_i32 = arith.constant 0 : i32
    %c0_i32_0 = arith.constant 0 : i32
    %c0_i32_1 = arith.constant 0 : i32
    return %arg0, %c0_i32, %c0_i32_0 : i32, i32, i32
  }
}

</mosaic_0001>

<bundles_post_ra>
// kernel: tpu_custom_call.1
= control target key start
LH: loop header
LB: loop body
LE: loop exit
PB: predicated region body
PF: predicated region fallthrough
CT: control target
= control target key end

     0   :  { %s2216_s24 = smov 0   ;;  %s3166_s0 = inlined_call_operand.vmem [shape: f32[2,128,6], index: 0, kind: input, shape index: {}]   ;;  %s3167_s1 = inlined_call_operand.vmem [shape: f32[6,256], index: 1, kind: input, shape index: {}]   ;;  %s3168_s2 = inlined_call_operand.vmem [shape: f32[1,256], index: 2, kind: input, shape index: {}]   ;;  %s3169_s3 = inlined_call_operand.vmem [shape: f32[1,256], index: 3, kind: input, shape index: {}]   ;;  %s3170_s4 = inlined_call_operand.vmem [shape: f32[3,256,80], index: 4, kind: input, shape index: {}]   ;;  %s3171_s5 = inlined_call_operand.vmem [shape: f32[1,80], index: 5, kind: input, shape index: {}]   ;;  %s3172_s6 = inlined_call_operand.vmem [shape: f32[1,80], index: 6, kind: input, shape index: {}]   ;;  %s3173_s7 = inlined_call_operand.vmem [shape: f32[2,128,80], index: 7, kind: output, shape index: {}]  }
   0x1 LB: > { %s1789_s25 = sadd.s32 4294967295, %s2173_s24   ;;  %p1793_p0 = scmp.ge.s32.totalorder %s2173_s24, 1  ;;  %s2173_s24 = sphi %s2216_s24, %s17_s24  }
   0x2   : > { %p237_p1 = scmp.lt.s32.totalorder %s2173_s24, 3 }
   0x4   : > { %p238_p2 = pnand %p1793_p0, %p237_p1 }
   0x6   : > { %241 = sbr.rel (%p238_p2) target bundleno = 552 (0x228), region = 48 }
   0xb   : > { %v296_v0 = vld [vmem:[%s3167_s1 + $0x8] sm:$0x3f]  ;;  %vm346_vm0 = vcmask 1045504   ;;  %v295_v1 = vld [vmem:[%s3167_s1] sm:$0x3f]  ;;  %v2175_v2 = vmov 0.0  }
   0xc   : > { %1798 = vmatprep.subr.msk.mxu0 %vm346_vm0, %v296_v0  ;;  %417 = vmatprep.mubr.f32.mxu0 %v2175_v2  ;;  %634 = vst [vmem:[#allocation2 + $0xb0] sm:$0xff] %v2175_v2  ;;  %635 = vst [vmem:[#allocation2 + $0xd0] sm:$0xff] %v2175_v2  ;;  %p269_p3 = scmp.lt.s32.totalorder %s1789_s25, 1  ;;  %v894_v3 = vld [vmem:[%s3170_s4 + $0xf8] sm:$0xff]  ;;  %v1846_v6 = vld [vmem:[%s3170_s4 + $0x1f0] sm:$0xff]  ;;  %vm297_vm1 = vcmask 48128  }
   0xd   : > { %666 = vst [vmem:[#allocation2 + $0x70] sm:$0x3] %v2175_v2  ;;  %667 = vst [vmem:[#allocation2 + $0xd8] sm:$0x3] %v2175_v2  ;;  %1799 = vmatpush1.msk.msra.mxu0 %vm346_vm0, %v295_v1  ;;  %v1847_v4 = vld [vmem:[%s3170_s4 + $0x1f8] sm:$0xff]  ;;  %v1830_v7 = vld [vmem:[%s3170_s4 + $0x170] sm:$0xff] }
   0xe   : > { %s3195_s25 = smov (!%p269_p3, %s1789_s25), 1  ;;  %1966 = vmatprep.subr.mxu0 %v894_v3  ;;  %1886 = vmatprep.subr.mxu1 %v1847_v4  ;;  %v1831_v5 = vld [vmem:[%s3170_s4 + $0x178] sm:$0xff]  ;;  %v1845_v9 = vld [vmem:[%s3170_s4 + $0x1e8] sm:$0xff]  ;;  %v893_v11 = vld [vmem:[%s3170_s4 + $0xf0] sm:$0xff]  ;;  %vm700_vm2 = vcmask 1040384   ;;  %vm966_vm3 = vcmask 1046528  }
   0xf   : > { %s1884_s15 = sshll.u32 %s3195_s25, 7  ;;  %1887 = vmatpush3.msra.mxu1 %v1831_v5  ;;  %v878_v8 = vld [vmem:[%s3170_s4 + $0x78] sm:$0xff]  ;;  %v877_v12 = vld [vmem:[%s3170_s4 + $0x70] sm:$0xff]  ;;  %v892_v14 = vld [vmem:[%s3170_s4 + $0xe8] sm:$0xff]  ;;  %vm1717_vm4 = vcmask 654336  }
  0x10   : > { %s2260_s20 = scalar_lea.vmem %s3166_s0, %s1884_s15  ;;  %1888 = vmatprep.subr.mxu1 %v1846_v6  ;;  %v876_v15 = vld [vmem:[%s3170_s4 + $0x68] sm:$0xff]  ;;  %v891_v16 = vld [vmem:[%s3170_s4 + $0xe0] sm:$0xff]  ;;  %v890_v19 = vld [vmem:[%s3170_s4 + $0xd8] sm:$0xff] }
  0x11   : > { %v279_v10 = vld [vmem:[%s2260_s20] sm:$0xff]  ;;  %1889 = vmatpush3.msra.mxu1 %v1830_v7  ;;  %v280_v13 = vld [vmem:[%s2260_s20 + $0x8] sm:$0xff]  ;;  %v281_v18 = vld [vmem:[%s2260_s20 + $0x10] sm:$0xff] }
  0x12   : > { %1800 = vmatmul.mubr.msk.f32.vlgmr.msra.gmra.mxu0 %vm297_vm1, %v279_v10  ;;  %1890 = vmatprep.subr.mxu1 %v1845_v9  ;;  %v875_v17 = vld [vmem:[%s3170_s4 + $0x60] sm:$0xff]  ;;  %v874_v20 = vld [vmem:[%s3170_s4 + $0x58] sm:$0xff]  ;;  %v889_v21 = vld [vmem:[%s3170_s4 + $0xd0] sm:$0xff] }
  0x13   : > { %423 = vmatprep.mubr.f32.mxu0 %v2175_v2  ;;  %1967 = vmatpush3.msra.mxu0 %v878_v8  ;;  %v873_v22 = vld [vmem:[%s3170_s4 + $0x50] sm:$0xff]  ;;  %v282_v23 = vld [vmem:[%s2260_s20 + $0x18] sm:$0xff]  ;;  %v283_v24 = vld [vmem:[%s2260_s20 + $0x20] sm:$0xff] }
  0x14   : > { %1968 = vmatprep.subr.mxu0 %v893_v11  ;;  %v284_v25 = vld [vmem:[%s2260_s20 + $0x28] sm:$0xff]  ;;  %v285_v26 = vld [vmem:[%s2260_s20 + $0x30] sm:$0xff]  ;;  %v286_v27 = vld [vmem:[%s2260_s20 + $0x38] sm:$0xff] }
  0x15   : > { %1969 = vmatpush3.msra.mxu0 %v877_v12  ;;  %v287_v28 = vld [vmem:[%s2260_s20 + $0x40] sm:$0xff]  ;;  %v288_v29 = vld [vmem:[%s2260_s20 + $0x48] sm:$0xff]  ;;  %v289_v30 = vld [vmem:[%s2260_s20 + $0x50] sm:$0xff] }
  0x16   : > { %1801 = vmatmul.mubr.msk.f32.gmra.mxu0 %vm297_vm1, %v280_v13  ;;  %1970 = vmatprep.subr.mxu0 %v892_v14  ;;  %v290_v31 = vld [vmem:[%s2260_s20 + $0x58] sm:$0xff]  ;;  %v291_v32 = vld [vmem:[%s2260_s20 + $0x60] sm:$0xff]  ;;  %v292_v33 = vld [vmem:[%s2260_s20 + $0x68] sm:$0xff] }
  0x17   : > { %429 = vmatprep.mubr.f32.mxu0 %v2175_v2  ;;  %1971 = vmatpush3.msra.mxu0 %v876_v15  ;;  %v293_v34 = vld [vmem:[%s2260_s20 + $0x70] sm:$0xff]  ;;  %v294_v35 = vld [vmem:[%s2260_s20 + $0x78] sm:$0xff]  ;;  %v1829_v36 = vld [vmem:[%s3170_s4 + $0x168] sm:$0xff]  ;;  %s3053_s20 = scalar_lea.vmem %s3173_s7, %s1884_s15 }
  0x18   : > { %1972 = vmatprep.subr.mxu0 %v891_v16  ;;  %1891 = vmatpush3.msra.mxu1 %v1829_v36  ;;  %v1844_v37 = vld [vmem:[%s3170_s4 + $0x1e0] sm:$0xff]  ;;  %v1843_v39 = vld [vmem:[%s3170_s4 + $0x1d8] sm:$0xff]  ;;  %v888_v40 = vld [vmem:[%s3170_s4 + $0xc8] sm:$0xff] }
  0x19   : > { %1973 = vmatpush3.msra.mxu0 %v875_v17  ;;  %1892 = vmatprep.subr.mxu1 %v1844_v37  ;;  %v1828_v38 = vld [vmem:[%s3170_s4 + $0x160] sm:$0xff]  ;;  %v1827_v41 = vld [vmem:[%s3170_s4 + $0x158] sm:$0xff]  ;;  %v872_v42 = vld [vmem:[%s3170_s4 + $0x48] sm:$0xff] }
  0x1a   : > { %1802 = vmatmul.mubr.msk.f32.gmra.mxu0 %vm297_vm1, %v281_v18  ;;  %1974 = vmatprep.subr.mxu0 %v890_v19  ;;  %v1842_v43 = vld [vmem:[%s3170_s4 + $0x1d0] sm:$0xff]  ;;  %v887_v44 = vld [vmem:[%s3170_s4 + $0xc0] sm:$0xff]  ;;  %v1841_v47 = vld [vmem:[%s3170_s4 + $0x1c8] sm:$0xff] }
  0x1b   : > { %435 = vmatprep.mubr.f32.mxu0 %v2175_v2  ;;  %1975 = vmatpush3.msra.mxu0 %v874_v20  ;;  %v1826_v45 = vld [vmem:[%s3170_s4 + $0x150] sm:$0xff]  ;;  %v871_v46 = vld [vmem:[%s3170_s4 + $0x40] sm:$0xff]  ;;  %v886_v48 = vld [vmem:[%s3170_s4 + $0xb8] sm:$0xff]  ;;  %v516_v20 = vlaneseq }
  0x1c   : > { %1976 = vmatprep.subr.mxu0 %v889_v21  ;;  %1893 = vmatpush3.msra.mxu1 %v1828_v38  ;;  %v1825_v49 = vld [vmem:[%s3170_s4 + $0x148] sm:$0xff]  ;;  %v870_v50 = vld [vmem:[%s3170_s4 + $0x38] sm:$0xff]  ;;  %v1840_v51 = vld [vmem:[%s3170_s4 + $0x1c0] sm:$0xff] }
  0x1d   : > { %1977 = vmatpush3.msra.mxu0 %v873_v22  ;;  %1894 = vmatprep.subr.mxu1 %v1843_v39  ;;  %v885_v52 = vld [vmem:[%s3170_s4 + $0xb0] sm:$0xff]  ;;  %v1824_v53 = vld [vmem:[%s3170_s4 + $0x140] sm:$0xff]  ;;  %v1839_v55 = vld [vmem:[%s3170_s4 + $0x1b8] sm:$0xff]  ;;  %v517_v21 = vshrl.u32 %v516_v20, 7 }
  0x1e   : > { %1803 = vmatmul.mubr.msk.f32.gmra.mxu0 %vm297_vm1, %v282_v23  ;;  %1978 = vmatprep.subr.mxu0 %v888_v40  ;;  %v869_v54 = vld [vmem:[%s3170_s4 + $0x30] sm:$0xff]  ;;  %v884_v56 = vld [vmem:[%s3170_s4 + $0xa8] sm:$0xff]  ;;  %v1823_v58 = vld [vmem:[%s3170_s4 + $0x138] sm:$0xff] }
  0x1f   : > { %441 = vmatprep.mubr.f32.mxu0 %v2175_v2  ;;  %1895 = vmatpush3.msra.mxu1 %v1827_v41  ;;  %v868_v57 = vld [vmem:[%s3170_s4 + $0x28] sm:$0xff]  ;;  %v883_v59 = vld [vmem:[%s3170_s4 + $0xa0] sm:$0xff]  ;;  %v1838_v60 = vld [vmem:[%s3170_s4 + $0x1b0] sm:$0xff]  ;;  %v518_v22 = vsub.s32 0, %v517_v21 }
  0x20   : > { %1979 = vmatpush3.msra.mxu0 %v872_v42  ;;  %1896 = vmatprep.subr.mxu1 %v1842_v43  ;;  %v867_v61 = vld [vmem:[%s3170_s4 + $0x20] sm:$0xff]  ;;  %v1822_v62 = vld [vmem:[%s3170_s4 + $0x130] sm:$0xff]  ;;  %v1837_v63 = vld [vmem:[%s3170_s4 + $0x1a8] sm:$0xff] }
  0x21   : > { %1980 = vmatprep.subr.mxu0 %v887_v44  ;;  %1897 = vmatpush3.msra.mxu1 %v1826_v45  ;;  %v882_v0 = vld [vmem:[%s3170_s4 + $0x98] sm:$0xff]  ;;  %v1821_v1 = vld [vmem:[%s3170_s4 + $0x128] sm:$0xff]  ;;  %v1836_v3 = vld [vmem:[%s3170_s4 + $0x1a0] sm:$0xff] }
  0x22   : > { %1804 = vmatmul.mubr.msk.f32.gmra.mxu0 %vm297_vm1, %v283_v24  ;;  %1898 = vmatprep.subr.mxu1 %v1841_v47  ;;  %v881_v4 = vld [vmem:[%s3170_s4 + $0x90] sm:$0xff]  ;;  %v1820_v5 = vld [vmem:[%s3170_s4 + $0x120] sm:$0xff]  ;;  %v1835_v7 = vld [vmem:[%s3170_s4 + $0x198] sm:$0xff]  ;;  %v522_v24 = vsub.s32 1, %v517_v21 }
  0x23   : > { %447 = vmatprep.mubr.f32.mxu0 %v2175_v2  ;;  %1981 = vmatpush3.msra.mxu0 %v871_v46  ;;  %v865_v6 = vld [vmem:[%s3170_s4 + $0x10] sm:$0xff]  ;;  %v880_v8 = vld [vmem:[%s3170_s4 + $0x88] sm:$0xff]  ;;  %v1819_v9 = vld [vmem:[%s3170_s4 + $0x118] sm:$0xff] }
  0x24   : > { %1982 = vmatprep.subr.mxu0 %v886_v48  ;;  %1899 = vmatpush3.msra.mxu1 %v1825_v49  ;;  %v864_v10 = vld [vmem:[%s3170_s4 + $0x8] sm:$0xff]  ;;  %v1834_v11 = vld [vmem:[%s3170_s4 + $0x190] sm:$0xff]  ;;  %v879_v12 = vld [vmem:[%s3170_s4 + $0x80] sm:$0xff] }
  0x25   : > { %1983 = vmatpush3.msra.mxu0 %v870_v50  ;;  %1900 = vmatprep.subr.mxu1 %v1840_v51  ;;  %v1818_v13 = vld [vmem:[%s3170_s4 + $0x110] sm:$0xff]  ;;  %v863_v14 = vld [vmem:[%s3170_s4] sm:$0xff]  ;;  %v1833_v15 = vld [vmem:[%s3170_s4 + $0x188] sm:$0xff] }
  0x26   : > { %1805 = vmatmul.mubr.msk.f32.gmra.mxu0 %vm297_vm1, %v284_v25  ;;  %1984 = vmatprep.subr.mxu0 %v885_v52  ;;  %v1817_v16 = vld [vmem:[%s3170_s4 + $0x108] sm:$0xff]  ;;  %v1832_v17 = vld [vmem:[%s3170_s4 + $0x180] sm:$0xff]  ;;  %v1879_v19 = vld [vmem:[%s3170_s4 + $0x2f8] sm:$0xff] }
  0x27   : > { %453 = vmatprep.mubr.f32.mxu0 %v2175_v2  ;;  %1901 = vmatpush3.msra.mxu1 %v1824_v53  ;;  %v1816_v18 = vld [vmem:[%s3170_s4 + $0x100] sm:$0xff]  ;;  %v1878_v20 = vld [vmem:[%s3170_s4 + $0x2f0] sm:$0xff] }
  0x28   : > { %1985 = vmatpush3.msra.mxu0 %v869_v54  ;;  %1902 = vmatprep.subr.mxu1 %v1839_v55  ;;  %v514_v23 = vld [vmem:[%s3168_s2] sm:$0x3] }
  0x29   : > { %1986 = vmatprep.subr.mxu0 %v884_v56  ;;  %1903 = vmatpush3.msra.mxu1 %v1823_v58  ;;  %v558_v25 = vld [vmem:[%s3169_s3] sm:$0x3] }
  0x2a   : > { %1806 = vmatmul.mubr.msk.f32.gmra.mxu0 %vm297_vm1, %v285_v26  ;;  %1904 = vmatprep.subr.mxu1 %v1838_v60  ;;  %v2495_v26 = vrot.slane %v514_v23, %v518_v22 }
  0x2b   : > { %459 = vmatprep.mubr.f32.mxu0 %v2175_v2  ;;  %1987 = vmatpush3.msra.mxu0 %v868_v57 }
  0x2c   : > { %1988 = vmatprep.subr.mxu0 %v883_v59  ;;  %1905 = vmatpush3.msra.mxu1 %v1822_v62 }
  0x2d   : > { %1989 = vmatpush3.msra.mxu0 %v867_v61  ;;  %1906 = vmatprep.subr.mxu1 %v1837_v63 }
  0x2e   : > { %1807 = vmatmul.mubr.msk.f32.gmra.mxu0 %vm297_vm1, %v286_v27  ;;  %1990 = vmatprep.subr.mxu0 %v882_v0  ;;  %v2497_v27 = vrot.slane %v558_v25, %v518_v22 }
  0x2f   : > { %465 = vmatprep.mubr.f32.mxu0 %v2175_v2  ;;  %1907 = vmatpush3.msra.mxu1 %v1821_v1 }
  0x30   : > { %1908 = vmatprep.subr.mxu1 %v1836_v3 }
  0x31   : > { %1909 = vmatpush3.msra.mxu1 %v1820_v5 }
  0x32   : > { %1808 = vmatmul.mubr.msk.f32.gmra.mxu0 %vm297_vm1, %v287_v28  ;;  %1910 = vmatprep.subr.mxu1 %v1835_v7  ;;  %v2499_v28 = vrot.slane %v514_v23, %v522_v24 }
  0x33   : > { %471 = vmatprep.mubr.f32.mxu0 %v2175_v2  ;;  %1911 = vmatpush3.msra.mxu1 %v1819_v9 }
  0x34   : > { %1912 = vmatprep.subr.mxu1 %v1834_v11 }
  0x35   : > { %1913 = vmatpush3.msra.mxu1 %v1818_v13 }
  0x36   : > { %1809 = vmatmul.mubr.msk.f32.gmra.mxu0 %vm297_vm1, %v288_v29  ;;  %1914 = vmatprep.subr.mxu1 %v1833_v15 }
  0x37   : > { %477 = vmatprep.mubr.f32.mxu0 %v2175_v2  ;;  %1915 = vmatpush3.msra.mxu1 %v1817_v16 }
  0x38   : > { %1916 = vmatprep.subr.mxu1 %v1832_v17 }
  0x39   : > { %1917 = vmatpush3.msra.mxu1 %v1816_v18 }
  0x3a   : > { %1810 = vmatmul.mubr.msk.f32.gmra.mxu0 %vm297_vm1, %v289_v30  ;;  %2126 = vmatprep.subr.mxu1 %v1879_v19 }
  0x3b   : > { %483 = vmatprep.mubr.f32.mxu0 %v2175_v2 }
  0x3e   : > { %1811 = vmatmul.mubr.msk.f32.gmra.mxu0 %vm297_vm1, %v290_v31  ;;  %v2502_v31 = vrot.slane %v558_v25, %v522_v24 }
  0x3f   : > { %489 = vmatprep.mubr.f32.mxu0 %v2175_v2 }
  0x42   : > { %1812 = vmatmul.mubr.msk.f32.gmra.mxu0 %vm297_vm1, %v291_v32 }
  0x43   : > { %495 = vmatprep.mubr.f32.mxu0 %v2175_v2 }
  0x46   : > { %1813 = vmatmul.mubr.msk.f32.gmra.mxu0 %vm297_vm1, %v292_v33 }
  0x47   : > { %501 = vmatprep.mubr.f32.mxu0 %v2175_v2 }
  0x4a   : > { %1814 = vmatmul.mubr.msk.f32.gmra.mxu0 %vm297_vm1, %v293_v34 }
  0x4b   : > { %507 = vmatprep.mubr.f32.mxu0 %v2175_v2  ;;  %v866_v2 = vld [vmem:[%s3170_s4 + $0x18] sm:$0xff] }
  0x4c   : > { %1991 = vmatpush3.msra.mxu0 %v866_v2 }
  0x4d   : > { %1992 = vmatprep.subr.mxu0 %v881_v4 }
  0x4e   : > { %1815 = vmatmul.mubr.msk.f32.gmra.mxu0 %vm297_vm1, %v294_v35 }
  0x4f   : > { %1993 = vmatpush3.msra.mxu0 %v865_v6 }
  0x50   : > { %1994 = vmatprep.subr.mxu0 %v880_v8  ;;  %v1863_v8 = vld [vmem:[%s3170_s4 + $0x278] sm:$0xff] }
  0x51   : > { %1995 = vmatpush3.msra.mxu0 %v864_v10 }
  0x52   : > { %1996 = vmatprep.subr.mxu0 %v879_v12 }
  0x53   : > { %1997 = vmatpush3.msra.mxu0 %v863_v14 }
  0x54   : > { %2046 = vmatprep.subr.mxu0 %v1879_v19 }
  0xd2   : > { %v419_v29 = vpop.f32.mrf.mxu0 }
  0xd3   : > { %v526_v30 = vmul.f32 %v2495_v26, %v419_v29  ;;  %v1862_v29 = vld [vmem:[%s3170_s4 + $0x270] sm:$0xff] }
  0xd4   : > { %v421_v32 = vpop.f32.mrf.mxu0 }
  0xd5   : > { %v570_v33 = vadd.f32 %v2497_v27, %v526_v30  ;;  %v527_v34 = vmul.f32 %v2499_v28, %v421_v32 }
  0xd6   : > { %v425_v35 = vpop.f32.mrf.mxu0 }
  0xd7   : > { %v602_v36 = vmax.f32 %v570_v33, 0.0  ;;  %v571_v37 = vadd.f32 %v2502_v31, %v527_v34  ;;  %v528_v38 = vmul.f32 %v2495_v26, %v425_v35 }
  0xd8   : > { %v427_v39 = vpop.f32.mrf.mxu0 }
  0xd9   : > { %v701_v40 = vrot.slane %v602_v36, 7  ;;  %v603_v41 = vmax.f32 %v571_v37, 0.0  ;;  %v572_v42 = vadd.f32 %v2497_v27, %v528_v38  ;;  %v529_v43 = vmul.f32 %v2499_v28, %v427_v39 }
  0xda   : > { %v431_v44 = vpop.f32.mrf.mxu0 }
  0xdb   : > { %797 = vst [vmem:[#allocation2 + $0xb0] sm:$0xfe] %v701_v40  ;;  %v702_v45 = vrot.slane %v603_v41, 7  ;;  %v604_v46 = vmax.f32 %v572_v42, 0.0  ;;  %v573_v47 = vadd.f32 %v2502_v31, %v529_v43  ;;  %v530_v48 = vmul.f32 %v2495_v26, %v431_v44 }
  0xdc   : > { %v433_v49 = vpop.f32.mrf.mxu0 }
  0xdd   : > { %798 = vst [vmem:[#allocation2 + $0xd0] sm:$0xfe] %v702_v45  ;;  %v703_v50 = vrot.slane %v604_v46, 7  ;;  %v605_v51 = vmax.f32 %v573_v47, 0.0  ;;  %v574_v52 = vadd.f32 %v2497_v27, %v530_v48  ;;  %v531_v53 = vmul.f32 %v2499_v28, %v433_v49  ;;  %v1877_v48 = vld [vmem:[%s3170_s4 + $0x2e8] sm:$0xff] }
  0xde   : > { %v437_v54 = vpop.f32.mrf.mxu0 }
  0xdf   : > { %v2515_v55 = vsel %vm700_vm2, %v701_v40, %v703_v50  ;;  %v705_v56 = vrot.slane %v605_v51, 7  ;;  %v606_v57 = vmax.f32 %v574_v52, 0.0  ;;  %v575_v58 = vadd.f32 %v2502_v31, %v531_v53 }
  0xe0   : > { %v532_v59 = vmul.f32 %v2495_v26, %v437_v54  ;;  %v439_v60 = vpop.f32.mrf.mxu0  ;;  %v968_v12 = vrot.slane %v2515_v55, 1 }
  0xe1   : > { %v2520_v61 = vsel %vm700_vm2, %v702_v45, %v705_v56  ;;  %v707_v62 = vrot.slane %v606_v57, 7  ;;  %v607_v63 = vmax.f32 %v575_v58, 0.0  ;;  %v533_v0 = vmul.f32 %v2499_v28, %v439_v60 }
  0xe2   : > { %v576_v1 = vadd.f32 %v2497_v27, %v532_v59  ;;  %v443_v2 = vpop.f32.mrf.mxu0  ;;  %v895_v3 = vld [vmem:[#allocation2 + $0xb0] sm:$0xfe]  ;;  %v971_v23 = vrot.slane %v2520_v61, 1 }
  0xe3   : > { %v2525_v4 = vsel %vm700_vm2, %v703_v50, %v707_v62  ;;  %v709_v5 = vrot.slane %v607_v63, 7  ;;  %v577_v6 = vadd.f32 %v2502_v31, %v533_v0  ;;  %v534_v7 = vmul.f32 %v2495_v26, %v443_v2  ;;  %v831_v19 = vld [vmem:[#allocation2 + $0xb0] sm:$0xff]  ;;  %v1861_v63 = vld [vmem:[%s3170_s4 + $0x268] sm:$0xff] }
  0xe4   : > { %v608_v9 = vmax.f32 %v576_v1, 0.0  ;;  %v445_v10 = vpop.f32.mrf.mxu0  ;;  %v832_v11 = vld [vmem:[#allocation2 + $0xd0] sm:$0xff]  ;;  %v967_v14 = vrot.slane %v895_v3, 1  ;;  %v973_v39 = vrot.slane %v2525_v4, 1 }
  0xe5   : > { %v896_v13 = vld [vmem:[#allocation2 + $0xd0] sm:$0xfe]  ;;  %v2534_v15 = vsel %vm700_vm2, %v705_v56, %v709_v5  ;;  %v609_v16 = vmax.f32 %v577_v6, 0.0  ;;  %v578_v17 = vadd.f32 %v2497_v27, %v534_v7  ;;  %v535_v18 = vmul.f32 %v2499_v28, %v445_v10  ;;  %1274 = vmatprep.mubr.f32.mxu0 %v832_v11 }
  0xe6   : > { %v711_v21 = vrot.slane %v608_v9, 7  ;;  %v449_v22 = vpop.f32.mrf.mxu0  ;;  %1275 = vmatmul.mubr.f32.vlgmr.msra.gmra.mxu0 %v831_v19  ;;  %v970_v24 = vrot.slane %v896_v13, 1  ;;  %v975_v25 = vrot.slane %v2534_v15, 1  ;;  %v969_v38 = vsel %vm966_vm3, %v967_v14, %v968_v12  ;;  %v1860_v19 = vld [vmem:[%s3170_s4 + $0x260] sm:$0xff] }
  0xe7   : > { %v713_v30 = vrot.slane %v609_v16, 7  ;;  %v610_v32 = vmax.f32 %v578_v17, 0.0  ;;  %v579_v33 = vadd.f32 %v2502_v31, %v535_v18  ;;  %v536_v34 = vmul.f32 %v2495_v26, %v449_v22  ;;  %1279 = vmatprep.mubr.f32.mxu0 %v2520_v61  ;;  %2047 = vmatpush3.msra.mxu0 %v1863_v8 }
  0xe8   : > { %v2550_v35 = vsel %vm700_vm2, %v707_v62, %v711_v21  ;;  %v451_v36 = vpop.f32.mrf.mxu0  ;;  %v972_v37 = vsel %vm966_vm3, %v970_v24, %v971_v23  ;;  %2048 = vmatprep.subr.mxu0 %v1878_v20  ;;  %v976_v46 = vsel %vm966_vm3, %v971_v23, %v975_v25  ;;  %v974_v56 = vsel %vm966_vm3, %v968_v12, %v973_v39  ;;  %v1875_v23 = vld [vmem:[%s3170_s4 + $0x2d8] sm:$0xff] }
  0xe9   : > { %v2556_v40 = vsel %vm700_vm2, %v709_v5, %v713_v30  ;;  %v715_v41 = vrot.slane %v610_v32, 7  ;;  %v611_v42 = vmax.f32 %v579_v33, 0.0  ;;  %v580_v43 = vadd.f32 %v2497_v27, %v536_v34  ;;  %1129 = vmatprep.mubr.f32.mxu1 %v972_v37  ;;  %2049 = vmatpush3.msra.mxu0 %v1862_v29  ;;  %v1876_v5 = vld [vmem:[%s3170_s4 + $0x2e0] sm:$0xff] }
  0xea   : > { %v537_v44 = vmul.f32 %v2499_v28, %v451_v36  ;;  %v455_v45 = vpop.f32.mrf.mxu0  ;;  %1280 = vmatmul.mubr.f32.gmra.mxu0 %v2515_v55  ;;  %1130 = vmatmul.mubr.f32.vlgmr.msra.gmra.mxu1 %v969_v38  ;;  %v979_v47 = vrot.slane %v2556_v40, 1  ;;  %v977_v57 = vrot.slane %v2550_v35, 1 }
  0xeb   : > { %v2567_v49 = vsel %vm700_vm2, %v711_v21, %v715_v41  ;;  %v717_v50 = vrot.slane %v611_v42, 7  ;;  %v612_v51 = vmax.f32 %v580_v43, 0.0  ;;  %v538_v52 = vmul.f32 %v2495_v26, %v455_v45  ;;  %1284 = vmatprep.mubr.f32.mxu0 %v2534_v15  ;;  %2142 = vmatpush3.msra.mxu1 %v1863_v8  ;;  %v1859_v43 = vld [vmem:[%s3170_s4 + $0x258] sm:$0xff] }
  0xec   : > { %v581_v53 = vadd.f32 %v2502_v31, %v537_v44  ;;  %v457_v54 = vpop.f32.mrf.mxu0  ;;  %1134 = vmatprep.mubr.f32.mxu1 %v976_v46  ;;  %2127 = vmatprep.subr.mxu1 %v1878_v20  ;;  %v980_v2 = vsel %vm966_vm3, %v975_v25, %v979_v47  ;;  %v978_v12 = vsel %vm966_vm3, %v973_v39, %v977_v57  ;;  %v981_v13 = vrot.slane %v2567_v49, 1 }
  0xed   : > { %v2575_v58 = vsel %vm700_vm2, %v713_v30, %v717_v50  ;;  %v719_v59 = vrot.slane %v612_v51, 7  ;;  %v582_v60 = vadd.f32 %v2497_v27, %v538_v52  ;;  %v539_v62 = vmul.f32 %v2499_v28, %v457_v54  ;;  %2143 = vmatpush3.msra.mxu1 %v1862_v29  ;;  %2050 = vmatprep.subr.mxu0 %v1877_v48 }
  0xee   : > { %v613_v0 = vmax.f32 %v581_v53, 0.0  ;;  %v461_v1 = vpop.f32.mrf.mxu0  ;;  %1285 = vmatmul.mubr.f32.gmra.mxu0 %v2525_v4  ;;  %1135 = vmatmul.mubr.f32.gmra.mxu1 %v974_v56  ;;  %v983_v3 = vrot.slane %v2575_v58, 1  ;;  %v982_v34 = vsel %vm966_vm3, %v977_v57, %v981_v13 }
  0xef   : > { %v2589_v6 = vsel %vm700_vm2, %v715_v41, %v719_v59  ;;  %v614_v7 = vmax.f32 %v582_v60, 0.0  ;;  %v583_v8 = vadd.f32 %v2502_v31, %v539_v62  ;;  %v540_v9 = vmul.f32 %v2495_v26, %v461_v1  ;;  %1289 = vmatprep.mubr.f32.mxu0 %v2556_v40  ;;  %1139 = vmatprep.mubr.f32.mxu1 %v980_v2  ;;  %v1858_v1 = vld [vmem:[%s3170_s4 + $0x250] sm:$0xff] }
  0xf0   : > { %v721_v10 = vrot.slane %v613_v0, 7  ;;  %v463_v11 = vpop.f32.mrf.mxu0  ;;  %2128 = vmatprep.subr.mxu1 %v1877_v48  ;;  %2051 = vmatpush3.msra.mxu0 %v1861_v63  ;;  %v984_v22 = vsel %vm966_vm3, %v979_v47, %v983_v3  ;;  %v985_v37 = vrot.slane %v2589_v6, 1  ;;  %v1874_v48 = vld [vmem:[%s3170_s4 + $0x2d0] sm:$0xff] }
  0xf1   : > { %v723_v14 = vrot.slane %v614_v7, 7  ;;  %v615_v16 = vmax.f32 %v583_v8, 0.0  ;;  %v584_v17 = vadd.f32 %v2497_v27, %v540_v9  ;;  %v541_v18 = vmul.f32 %v2499_v28, %v463_v11  ;;  %2144 = vmatpush3.msra.mxu1 %v1861_v63  ;;  %2052 = vmatprep.subr.mxu0 %v1876_v5  ;;  %v1873_v8 = vld [vmem:[%s3170_s4 + $0x2c8] sm:$0xff] }
  0xf2   : > { %v2602_v20 = vsel %vm700_vm2, %v717_v50, %v721_v10  ;;  %v467_v21 = vpop.f32.mrf.mxu0  ;;  %1290 = vmatmul.mubr.f32.gmra.mxu0 %v2550_v35  ;;  %1140 = vmatmul.mubr.f32.gmra.mxu1 %v978_v12  ;;  %v986_v57 = vsel %vm966_vm3, %v981_v13, %v985_v37 }
  0xf3   : > { %v2610_v24 = vsel %vm700_vm2, %v719_v59, %v723_v14  ;;  %v725_v25 = vrot.slane %v615_v16, 7  ;;  %v616_v29 = vmax.f32 %v584_v17, 0.0  ;;  %v585_v30 = vadd.f32 %v2502_v31, %v541_v18  ;;  %1294 = vmatprep.mubr.f32.mxu0 %v2575_v58  ;;  %1144 = vmatprep.mubr.f32.mxu1 %v984_v22 }
  0xf4   : > { %v542_v32 = vmul.f32 %v2495_v26, %v467_v21  ;;  %v469_v33 = vpop.f32.mrf.mxu0  ;;  %2129 = vmatprep.subr.mxu1 %v1876_v5  ;;  %v987_v36 = vrot.slane %v2602_v20, 1  ;;  %2053 = vmatpush3.msra.mxu0 %v1860_v19  ;;  %v989_v59 = vrot.slane %v2610_v24, 1 }
  0xf5   : > { %v2619_v38 = vsel %vm700_vm2, %v721_v10, %v725_v25  ;;  %v727_v39 = vrot.slane %v616_v29, 7  ;;  %v617_v41 = vmax.f32 %v585_v30, 0.0  ;;  %v543_v42 = vmul.f32 %v2499_v28, %v469_v33  ;;  %2145 = vmatpush3.msra.mxu1 %v1860_v19  ;;  %2054 = vmatprep.subr.mxu0 %v1875_v23  ;;  %v1872_v33 = vld [vmem:[%s3170_s4 + $0x2c0] sm:$0xff] }
  0xf6   : > { %v586_v44 = vadd.f32 %v2497_v27, %v542_v32  ;;  %v473_v45 = vpop.f32.mrf.mxu0  ;;  %1295 = vmatmul.mubr.f32.gmra.mxu0 %v2567_v49  ;;  %1145 = vmatmul.mubr.f32.gmra.mxu1 %v982_v34  ;;  %v988_v46 = vsel %vm966_vm3, %v983_v3, %v987_v36  ;;  %v991_v47 = vrot.slane %v2619_v38, 1  ;;  %v990_v16 = vsel %vm966_vm3, %v985_v37, %v989_v59 }
  0xf7   : > { %v2633_v50 = vsel %vm700_vm2, %v723_v14, %v727_v39  ;;  %v729_v51 = vrot.slane %v617_v41, 7  ;;  %v587_v52 = vadd.f32 %v2502_v31, %v543_v42  ;;  %v544_v53 = vmul.f32 %v2495_v26, %v473_v45  ;;  %1299 = vmatprep.mubr.f32.mxu0 %v2602_v20  ;;  %1149 = vmatprep.mubr.f32.mxu1 %v988_v46 }
  0xf8   : > { %v618_v54 = vmax.f32 %v586_v44, 0.0  ;;  %v475_v56 = vpop.f32.mrf.mxu0  ;;  %2130 = vmatprep.subr.mxu1 %v1875_v23  ;;  %2055 = vmatpush3.msra.mxu0 %v1859_v43  ;;  %v992_v5 = vsel %vm966_vm3, %v987_v36, %v991_v47  ;;  %v993_v17 = vrot.slane %v2633_v50, 1  ;;  %v1857_v23 = vld [vmem:[%s3170_s4 + $0x248] sm:$0xff] }
  0xf9   : > { %v2641_v60 = vsel %vm700_vm2, %v725_v25, %v729_v51  ;;  %v619_v62 = vmax.f32 %v587_v52, 0.0  ;;  %v588_v63 = vadd.f32 %v2497_v27, %v544_v53  ;;  %v545_v0 = vmul.f32 %v2499_v28, %v475_v56  ;;  %2146 = vmatpush3.msra.mxu1 %v1859_v43  ;;  %2056 = vmatprep.subr.mxu0 %v1874_v48 }
  0xfa   : > { %v731_v2 = vrot.slane %v618_v54, 7  ;;  %v479_v3 = vpop.f32.mrf.mxu0  ;;  %1300 = vmatmul.mubr.f32.gmra.mxu0 %v2589_v6  ;;  %1150 = vmatmul.mubr.f32.gmra.mxu1 %v986_v57  ;;  %v995_v7 = vrot.slane %v2641_v60, 1  ;;  %v994_v43 = vsel %vm966_vm3, %v989_v59, %v993_v17  ;;  %v1871_v57 = vld [vmem:[%s3170_s4 + $0x2b8] sm:$0xff] }
  0xfb   : > { %v733_v9 = vrot.slane %v619_v62, 7  ;;  %v620_v10 = vmax.f32 %v588_v63, 0.0  ;;  %v589_v11 = vadd.f32 %v2502_v31, %v545_v0  ;;  %v546_v12 = vmul.f32 %v2495_v26, %v479_v3  ;;  %1304 = vmatprep.mubr.f32.mxu0 %v2619_v38  ;;  %1154 = vmatprep.mubr.f32.mxu1 %v992_v5 }
  0xfc   : > { %v2658_v13 = vsel %vm700_vm2, %v727_v39, %v731_v2  ;;  %v481_v14 = vpop.f32.mrf.mxu0  ;;  %2131 = vmatprep.subr.mxu1 %v1874_v48  ;;  %2057 = vmatpush3.msra.mxu0 %v1858_v1  ;;  %v996_v30 = vsel %vm966_vm3, %v991_v47, %v995_v7 }
  0xfd   : > { %v2663_v18 = vsel %vm700_vm2, %v729_v51, %v733_v9  ;;  %v735_v19 = vrot.slane %v620_v10, 7  ;;  %v621_v21 = vmax.f32 %v589_v11, 0.0  ;;  %v590_v22 = vadd.f32 %v2497_v27, %v546_v12  ;;  %2147 = vmatpush3.msra.mxu1 %v1858_v1  ;;  %2058 = vmatprep.subr.mxu0 %v1873_v8  ;;  %v1856_v51 = vld [vmem:[%s3170_s4 + $0x240] sm:$0xff]  ;;  %v1855_v11 = vld [vmem:[%s3170_s4 + $0x238] sm:$0xff] }
  0xfe   : > { %v547_v25 = vmul.f32 %v2499_v28, %v481_v14  ;;  %v485_v29 = vpop.f32.mrf.mxu0  ;;  %1305 = vmatmul.mubr.f32.gmra.mxu0 %v2610_v24  ;;  %1155 = vmatmul.mubr.f32.gmra.mxu1 %v990_v16  ;;  %v999_v32 = vrot.slane %v2663_v18, 1  ;;  %v997_v44 = vrot.slane %v2658_v13, 1 }
  0xff   : > { %v2677_v34 = vsel %vm700_vm2, %v731_v2, %v735_v19  ;;  %v737_v36 = vrot.slane %v621_v21, 7  ;;  %v622_v37 = vmax.f32 %v590_v22, 0.0  ;;  %v548_v39 = vmul.f32 %v2495_v26, %v485_v29  ;;  %1309 = vmatprep.mubr.f32.mxu0 %v2641_v60  ;;  %1159 = vmatprep.mubr.f32.mxu1 %v996_v30 }
 0x100   : > { %v591_v41 = vadd.f32 %v2502_v31, %v547_v25  ;;  %v487_v42 = vpop.f32.mrf.mxu0  ;;  %2132 = vmatprep.subr.mxu1 %v1873_v8  ;;  %2059 = vmatpush3.msra.mxu0 %v1857_v23  ;;  %v1000_v54 = vsel %vm966_vm3, %v995_v7, %v999_v32  ;;  %v998_v3 = vsel %vm966_vm3, %v993_v17, %v997_v44  ;;  %v1001_v5 = vrot.slane %v2677_v34, 1  ;;  %v1870_v17 = vld [vmem:[%s3170_s4 + $0x2b0] sm:$0xff] }
 0x101   : > { %v2685_v45 = vsel %vm700_vm2, %v733_v9, %v737_v36  ;;  %v739_v46 = vrot.slane %v622_v37, 7  ;;  %v592_v47 = vadd.f32 %v2497_v27, %v548_v39  ;;  %v549_v48 = vmul.f32 %v2499_v28, %v487_v42  ;;  %2148 = vmatpush3.msra.mxu1 %v1857_v23  ;;  %2060 = vmatprep.subr.mxu0 %v1872_v33  ;;  %v1854_v42 = vld [vmem:[%s3170_s4 + $0x230] sm:$0xff] }
 0x102   : > { %v623_v52 = vmax.f32 %v591_v41, 0.0  ;;  %v491_v53 = vpop.f32.mrf.mxu0  ;;  %1310 = vmatmul.mubr.f32.gmra.mxu0 %v2633_v50  ;;  %1160 = vmatmul.mubr.f32.gmra.mxu1 %v994_v43  ;;  %v1003_v56 = vrot.slane %v2685_v45, 1  ;;  %v1002_v30 = vsel %vm966_vm3, %v997_v44, %v1001_v5 }
 0x103   : > { %v2699_v59 = vsel %vm700_vm2, %v735_v19, %v739_v46  ;;  %v624_v62 = vmax.f32 %v592_v47, 0.0  ;;  %v593_v63 = vadd.f32 %v2502_v31, %v549_v48  ;;  %v550_v0 = vmul.f32 %v2495_v26, %v491_v53  ;;  %1314 = vmatprep.mubr.f32.mxu0 %v2663_v18  ;;  %1164 = vmatprep.mubr.f32.mxu1 %v1000_v54  ;;  %v1869_v48 = vld [vmem:[%s3170_s4 + $0x2a8] sm:$0xff] }
 0x104   : > { %v741_v1 = vrot.slane %v623_v52, 7  ;;  %v493_v2 = vpop.f32.mrf.mxu0  ;;  %2133 = vmatprep.subr.mxu1 %v1872_v33  ;;  %2061 = vmatpush3.msra.mxu0 %v1856_v51  ;;  %v1004_v16 = vsel %vm966_vm3, %v999_v32, %v1003_v56  ;;  %v1005_v33 = vrot.slane %v2699_v59, 1 }
 0x105   : > { %v743_v7 = vrot.slane %v624_v62, 7  ;;  %v625_v8 = vmax.f32 %v593_v63, 0.0  ;;  %v594_v9 = vadd.f32 %v2497_v27, %v550_v0  ;;  %v551_v10 = vmul.f32 %v2499_v28, %v493_v2  ;;  %2149 = vmatpush3.msra.mxu1 %v1856_v51  ;;  %2062 = vmatprep.subr.mxu0 %v1871_v57 }
 0x106   : > { %v2712_v12 = vsel %vm700_vm2, %v737_v36, %v741_v1  ;;  %v497_v14 = vpop.f32.mrf.mxu0  ;;  %1315 = vmatmul.mubr.f32.gmra.mxu0 %v2658_v13  ;;  %1165 = vmatmul.mubr.f32.gmra.mxu1 %v998_v3 }
 0x107   : > { %v2720_v19 = vsel %vm700_vm2, %v739_v46, %v743_v7  ;;  %v745_v21 = vrot.slane %v625_v8, 7  ;;  %v626_v22 = vmax.f32 %v594_v9, 0.0  ;;  %v595_v23 = vadd.f32 %v2502_v31, %v551_v10  ;;  %1319 = vmatprep.mubr.f32.mxu0 %v2685_v45  ;;  %1169 = vmatprep.mubr.f32.mxu1 %v1004_v16 }
 0x108   : > { %v552_v25 = vmul.f32 %v2495_v26, %v497_v14  ;;  %v499_v29 = vpop.f32.mrf.mxu0  ;;  %2134 = vmatprep.subr.mxu1 %v1871_v57  ;;  %v1007_v32 = vrot.slane %v2712_v12, 1  ;;  %2063 = vmatpush3.msra.mxu0 %v1855_v11  ;;  %v1009_v63 = vrot.slane %v2720_v19, 1 }
 0x109   : > { %v2729_v36 = vsel %vm700_vm2, %v741_v1, %v745_v21  ;;  %v747_v37 = vrot.slane %v626_v22, 7  ;;  %v627_v39 = vmax.f32 %v595_v23, 0.0  ;;  %v553_v41 = vmul.f32 %v2499_v28, %v499_v29  ;;  %2150 = vmatpush3.msra.mxu1 %v1855_v11  ;;  %2064 = vmatprep.subr.mxu0 %v1870_v17  ;;  %v1868_v11 = vld [vmem:[%s3170_s4 + $0x2a0] sm:$0xff] }
 0x10a   : > { %v596_v43 = vadd.f32 %v2497_v27, %v552_v25  ;;  %v503_v44 = vpop.f32.mrf.mxu0  ;;  %1320 = vmatmul.mubr.f32.gmra.mxu0 %v2677_v34  ;;  %1170 = vmatmul.mubr.f32.gmra.mxu1 %v1002_v30  ;;  %v1008_v46 = vsel %vm966_vm3, %v1003_v56, %v1007_v32  ;;  %v1011_v47 = vrot.slane %v2729_v36, 1  ;;  %v1006_v56 = vsel %vm966_vm3, %v1001_v5, %v1005_v33 }
 0x10b   : > { %v2743_v51 = vsel %vm700_vm2, %v743_v7, %v747_v37  ;;  %v749_v52 = vrot.slane %v627_v39, 7  ;;  %v597_v53 = vadd.f32 %v2502_v31, %v553_v41  ;;  %v554_v54 = vmul.f32 %v2495_v26, %v503_v44  ;;  %1324 = vmatprep.mubr.f32.mxu0 %v2712_v12  ;;  %1174 = vmatprep.mubr.f32.mxu1 %v1008_v46  ;;  %v1853_v7 = vld [vmem:[%s3170_s4 + $0x228] sm:$0xff] }
 0x10c   : > { %v628_v57 = vmax.f32 %v596_v43, 0.0  ;;  %v505_v62 = vpop.f32.mrf.mxu0  ;;  %2135 = vmatprep.subr.mxu1 %v1870_v17  ;;  %2065 = vmatpush3.msra.mxu0 %v1854_v42  ;;  %v1012_v5 = vsel %vm966_vm3, %v1007_v32, %v1011_v47  ;;  %v1010_v25 = vsel %vm966_vm3, %v1005_v33, %v1009_v63  ;;  %v1013_v29 = vrot.slane %v2743_v51, 1  ;;  %v1867_v43 = vld [vmem:[%s3170_s4 + $0x298] sm:$0xff] }
 0x10d   : > { %v2751_v0 = vsel %vm700_vm2, %v745_v21, %v749_v52  ;;  %v629_v1 = vmax.f32 %v597_v53, 0.0  ;;  %v598_v2 = vadd.f32 %v2497_v27, %v554_v54  ;;  %v555_v3 = vmul.f32 %v2499_v28, %v505_v62  ;;  %2151 = vmatpush3.msra.mxu1 %v1854_v42  ;;  %2066 = vmatprep.subr.mxu0 %v1869_v48 }
 0x10e   : > { %v751_v8 = vrot.slane %v628_v57, 7  ;;  %v509_v9 = vpop.f32.mrf.mxu0  ;;  %1325 = vmatmul.mubr.f32.gmra.mxu0 %v2699_v59  ;;  %1175 = vmatmul.mubr.f32.gmra.mxu1 %v1006_v56  ;;  %v1015_v10 = vrot.slane %v2751_v0, 1  ;;  %v1014_v53 = vsel %vm966_vm3, %v1009_v63, %v1013_v29  ;;  %v1851_v57 = vld [vmem:[%s3170_s4 + $0x218] sm:$0xff]  ;;  %v1866_v63 = vld [vmem:[%s3170_s4 + $0x290] sm:$0xff] }
 0x10f   : > { %v753_v14 = vrot.slane %v629_v1, 7  ;;  %v630_v16 = vmax.f32 %v598_v2, 0.0  ;;  %v599_v17 = vadd.f32 %v2502_v31, %v555_v3  ;;  %v556_v21 = vmul.f32 %v2495_v26, %v509_v9  ;;  %1329 = vmatprep.mubr.f32.mxu0 %v2729_v36  ;;  %1179 = vmatprep.mubr.f32.mxu1 %v1012_v5  ;;  %v1850_v5 = vld [vmem:[%s3170_s4 + $0x210] sm:$0xff] }
 0x110   : > { %v2768_v22 = vsel %vm700_vm2, %v747_v37, %v751_v8  ;;  %v511_v23 = vpop.f32.mrf.mxu0  ;;  %2136 = vmatprep.subr.mxu1 %v1869_v48  ;;  %2067 = vmatpush3.msra.mxu0 %v1853_v7  ;;  %v1852_v37 = vld [vmem:[%s3170_s4 + $0x220] sm:$0xff]  ;;  %v1016_v33 = vsel %vm966_vm3, %v1011_v47, %v1015_v10  ;;  %v1397_v2 = vrot.slane %v2515_v55, 2  ;;  %v1865_v55 = vld [vmem:[%s3170_s4 + $0x288] sm:$0xff] }
 0x111   : > { %v2773_v30 = vsel %vm700_vm2, %v749_v52, %v753_v14  ;;  %v755_v32 = vrot.slane %v630_v16, 7  ;;  %v631_v39 = vmax.f32 %v599_v17, 0.0  ;;  %v600_v26 = vadd.f32 %v2497_v27, %v556_v21  ;;  %2152 = vmatpush3.msra.mxu1 %v1853_v7  ;;  %2068 = vmatprep.subr.mxu0 %v1868_v11  ;;  %v1356_v16 = vld [vmem:[#allocation2 + $0xd0] sm:$0xfc]  ;;  %v1849_v17 = vld [vmem:[%s3170_s4 + $0x208] sm:$0xff] }
 0x112   : > { %v557_v41 = vmul.f32 %v2499_v28, %v511_v23  ;;  %1330 = vmatmul.mubr.f32.gmra.mxu0 %v2720_v19  ;;  %1180 = vmatmul.mubr.f32.gmra.mxu1 %v1010_v25  ;;  %v1019_v42 = vrot.slane %v2773_v30, 1  ;;  %v1017_v54 = vrot.slane %v2768_v22, 1 }
 0x113   : > { %v2787_v27 = vsel %vm700_vm2, %v751_v8, %v755_v32  ;;  %v757_v44 = vrot.slane %v631_v39, 7  ;;  %v632_v46 = vmax.f32 %v600_v26, 0.0  ;;  %1334 = vmatprep.mubr.f32.mxu0 %v2751_v0  ;;  %1184 = vmatprep.mubr.f32.mxu1 %v1016_v33  ;;  %v1355_v39 = vld [vmem:[#allocation2 + $0xb0] sm:$0xfc] }
 0x114   : > { %v601_v28 = vadd.f32 %v2502_v31, %v557_v41  ;;  %2137 = vmatprep.subr.mxu1 %v1868_v11  ;;  %v1020_v48 = vsel %vm966_vm3, %v1015_v10, %v1019_v42  ;;  %2069 = vmatpush3.msra.mxu0 %v1852_v37  ;;  %v1402_v31 = vrot.slane %v2525_v4, 2  ;;  %v1018_v8 = vsel %vm966_vm3, %v1013_v29, %v1017_v54  ;;  %v1848_v41 = vld [vmem:[%s3170_s4 + $0x200] sm:$0xff] }
 0x115   : > { %v2793_v47 = vsel %vm700_vm2, %v753_v14, %v757_v44  ;;  %v759_v52 = vrot.slane %v632_v46, 7  ;;  %2153 = vmatpush3.msra.mxu1 %v1852_v37  ;;  %2070 = vmatprep.subr.mxu0 %v1867_v43  ;;  %v1021_v9 = vrot.slane %v2787_v27, 1  ;;  %v1399_v29 = vrot.slane %v1356_v16, 2 }
 0x116   : > { %v633_v62 = vmax.f32 %v601_v28, 0.0  ;;  %1335 = vmatmul.mubr.f32.gmra.mxu0 %v2743_v51  ;;  %1185 = vmatmul.mubr.f32.gmra.mxu1 %v1014_v53  ;;  %v1023_v56 = vrot.slane %v2793_v47, 1  ;;  %v1403_v11 = vsel %vm346_vm0, %v1397_v2, %v1402_v31  ;;  %v1400_v37 = vrot.slane %v2520_v61, 2 }
 0x117   : > { %v2807_v1 = vsel %vm700_vm2, %v755_v32, %v759_v52  ;;  %829 = vst [vmem:[#allocation2 + $0x70] sm:$0x1] %v759_v52  ;;  %1339 = vmatprep.mubr.f32.mxu0 %v2773_v30  ;;  %1189 = vmatprep.mubr.f32.mxu1 %v1020_v48  ;;  %v1022_v21 = vsel %vm966_vm3, %v1017_v54, %v1021_v9  ;;  %v1864_v32 = vld [vmem:[%s3170_s4 + $0x280] sm:$0xff]  ;;  %v1404_v46 = vrot.slane %v2534_v15, 2  ;;  %v1412_v28 = vrot.slane %v2575_v58, 2 }
 0x118   : > { %v761_v3 = vrot.slane %v633_v62, 7  ;;  %2138 = vmatprep.subr.mxu1 %v1867_v43  ;;  %2071 = vmatpush3.msra.mxu0 %v1851_v57  ;;  %v1024_v7 = vsel %vm966_vm3, %v1019_v42, %v1023_v56  ;;  %v1025_v23 = vrot.slane %v2807_v1, 1  ;;  %v1396_v43 = vrot.slane %v1355_v39, 2 }
 0x119   : > { %2154 = vmatpush3.msra.mxu1 %v1851_v57  ;;  %2072 = vmatprep.subr.mxu0 %v1866_v63  ;;  %v1401_v61 = vsel %vm346_vm0, %v1399_v29, %v1400_v37  ;;  %v1408_v52 = vrot.slane %v2556_v40, 2  ;;  %v1410_v54 = vrot.slane %v2567_v49, 2  ;;  %v1416_v57 = vrot.slane %v2602_v20, 2 }
 0x11a   : > { %v2818_v10 = vsel %vm700_vm2, %v757_v44, %v761_v3  ;;  %830 = vst [vmem:[#allocation2 + $0xd8] sm:$0x1] %v761_v3  ;;  %1340 = vmatmul.mubr.f32.gmra.mxu0 %v2768_v22  ;;  %1190 = vmatmul.mubr.f32.gmra.mxu1 %v1018_v8  ;;  %v1026_v33 = vsel %vm966_vm3, %v1021_v9, %v1025_v23  ;;  %v1406_v40 = vrot.slane %v2550_v35, 2  ;;  %v1414_v49 = vrot.slane %v2589_v6, 2 }
 0x11b   : > { %1344 = vmatprep.mubr.f32.mxu0 %v2793_v47  ;;  %1194 = vmatprep.mubr.f32.mxu1 %v1024_v7  ;;  %v1027_v14 = vrot.slane %v2818_v10, 1  ;;  %v1398_v15 = vsel %vm346_vm0, %v1396_v43, %v1397_v2  ;;  %v1405_v62 = vsel %vm346_vm0, %v1400_v37, %v1404_v46  ;;  %v1420_v2 = vrot.slane %v2619_v38, 2 }
 0x11c   : > { %2139 = vmatprep.subr.mxu1 %v1866_v63  ;;  %2073 = vmatpush3.msra.mxu0 %v1850_v5  ;;  %v1411_v63 = vsel %vm346_vm0, %v1406_v40, %v1410_v54  ;;  %v1409_v3 = vsel %vm346_vm0, %v1404_v46, %v1408_v52  ;;  %v1417_v20 = vsel %vm346_vm0, %v1412_v28, %v1416_v57  ;;  %v1418_v7 = vrot.slane %v2610_v24, 2 }
 0x11d   : > { %2155 = vmatpush3.msra.mxu1 %v1850_v5  ;;  %2074 = vmatprep.subr.mxu0 %v1865_v55  ;;  %v1028_v25 = vsel %vm966_vm3, %v1023_v56, %v1027_v14  ;;  %v1413_v56 = vsel %vm346_vm0, %v1408_v52, %v1412_v28  ;;  %v1407_v35 = vsel %vm346_vm0, %v1402_v31, %v1406_v40  ;;  %v1424_v8 = vrot.slane %v2641_v60, 2 }
 0x11e   : > { %1345 = vmatmul.mubr.f32.gmra.mxu0 %v2787_v27  ;;  %1195 = vmatmul.mubr.f32.gmra.mxu1 %v1022_v21  ;;  %v897_v26 = vld [vmem:[#allocation2 + $0x70] sm:$0x1]  ;;  %v1415_v6 = vsel %vm346_vm0, %v1410_v54, %v1414_v49  ;;  %v1421_v38 = vsel %vm346_vm0, %v1416_v57, %v1420_v2  ;;  %v1422_v9 = vrot.slane %v2633_v50, 2  ;;  %v1419_v5 = vsel %vm346_vm0, %v1414_v49, %v1418_v7 }
 0x11f   : > { %1349 = vmatprep.mubr.f32.mxu0 %v2818_v10  ;;  %2075 = vmatpush3.msra.mxu0 %v1849_v17  ;;  %v1029_v44 = vrot.slane %v897_v26, 1  ;;  %v1425_v4 = vsel %vm346_vm0, %v1420_v2, %v1424_v8  ;;  %v1426_v24 = vrot.slane %v2658_v13, 2  ;;  %v1432_v60 = vrot.slane %v2685_v45, 2 }
 0x120   : > { %1199 = vmatprep.mubr.f32.mxu1 %v1028_v25  ;;  %2140 = vmatprep.subr.mxu1 %v1865_v55  ;;  %v1428_v55 = vrot.slane %v2663_v18, 2  ;;  %v1423_v31 = vsel %vm346_vm0, %v1418_v7, %v1422_v9  ;;  %v1430_v50 = vrot.slane %v2677_v34, 2  ;;  %v1436_v18 = vrot.slane %v2712_v12, 2 }
 0x121   : > { %2076 = vmatprep.subr.mxu0 %v1864_v32  ;;  %2156 = vmatpush3.msra.mxu1 %v1849_v17  ;;  %v898_v42 = vld [vmem:[#allocation2 + $0xd8] sm:$0x1]  ;;  %v1030_v58 = vsel %vm966_vm3, %v1025_v23, %v1029_v44  ;;  %v1434_v13 = vrot.slane %v2699_v59, 2  ;;  %v1440_v45 = vrot.slane %v2729_v36, 2  ;;  %v1438_v34 = vrot.slane %v2720_v19, 2 }
 0x122   : > { %1350 = vmatmul.mubr.f32.gmra.mxu0 %v2807_v1  ;;  %1200 = vmatmul.mubr.f32.gmra.mxu1 %v1026_v33  ;;  %v1031_v48 = vrot.slane %v898_v42, 1  ;;  %v1433_v16 = vsel %vm346_vm0, %v1428_v55, %v1432_v60  ;;  %v1431_v17 = vsel %vm346_vm0, %v1426_v24, %v1430_v50  ;;  %v1437_v21 = vsel %vm346_vm0, %v1432_v60, %v1436_v18  ;;  %v1358_v33 = vld [vmem:[#allocation2 + $0xd8] sm:$0x3]  ;;  %v1357_v44 = vld [vmem:[#allocation2 + $0x70] sm:$0x3] }
 0x123   : > { %1558 = vmatprep.mubr.f32.mxu0 %v1401_v61  ;;  %2077 = vmatpush3.msra.mxu0 %v1848_v41  ;;  %v1435_v23 = vsel %vm346_vm0, %v1430_v50, %v1434_v13  ;;  %v1444_v12 = vrot.slane %v2751_v0, 2  ;;  %v1441_v25 = vsel %vm346_vm0, %v1436_v18, %v1440_v45  ;;  %v1442_v59 = vrot.slane %v2743_v51, 2 }
 0x124   : > { %v1032_v53 = vsel %vm966_vm3, %v1027_v14, %v1031_v48  ;;  %2141 = vmatprep.subr.mxu1 %v1864_v32  ;;  %v1427_v14 = vsel %vm346_vm0, %v1422_v9, %v1426_v24  ;;  %v1439_v29 = vsel %vm346_vm0, %v1434_v13, %v1438_v34  ;;  %v1448_v36 = vrot.slane %v2773_v30, 2 }
 0x125   : > { %1204 = vmatprep.mubr.f32.mxu1 %v1032_v53  ;;  %2157 = vmatpush3.msra.mxu1 %v1848_v41  ;;  %v1445_v32 = vsel %vm346_vm0, %v1440_v45, %v1444_v12  ;;  %v1446_v19 = vrot.slane %v2768_v22, 2  ;;  %v1443_v39 = vsel %vm346_vm0, %v1438_v34, %v1442_v59  ;;  %v1452_v0 = vrot.slane %v2793_v47, 2 }
 0x126   : > { %1559 = vmatmul.mubr.f32.vlgmr.msra.gmra.mxu0 %v1398_v15  ;;  %1205 = vmatmul.mubr.f32.gmra.mxu1 %v1030_v58  ;;  %v1449_v26 = vsel %vm346_vm0, %v1444_v12, %v1448_v36  ;;  %v1450_v51 = vrot.slane %v2787_v27, 2  ;;  %v1456_v30 = vrot.slane %v2818_v10, 2  ;;  %v1454_v22 = vrot.slane %v2807_v1, 2 }
 0x127   : > { %1563 = vmatprep.mubr.f32.mxu0 %v1405_v62  ;;  %1573 = vmatprep.mubr.f32.mxu1 %v1413_v56  ;;  %v1447_v37 = vsel %vm346_vm0, %v1442_v59, %v1446_v19  ;;  %v1453_v41 = vsel %vm346_vm0, %v1448_v36, %v1452_v0  ;;  %v1460_v43 = vrot.slane %v1358_v33, 2  ;;  %v1458_v46 = vrot.slane %v1357_v44, 2 }
 0x128   : > { %v1451_v42 = vsel %vm346_vm0, %v1446_v19, %v1450_v51  ;;  %v1457_v47 = vsel %vm346_vm0, %v1452_v0, %v1456_v30  ;;  %v1455_v27 = vsel %vm346_vm0, %v1450_v51, %v1454_v22 }
 0x129   : > { %v1461_v10 = vsel %vm346_vm0, %v1456_v30, %v1460_v43  ;;  %v1459_v28 = vsel %vm346_vm0, %v1454_v22, %v1458_v46 }
 0x12a   : > { %1564 = vmatmul.mubr.f32.gmra.mxu0 %v1403_v11  ;;  %1574 = vmatmul.mubr.f32.vlgmr.msra.gmra.mxu1 %v1411_v63  ;;  %v1429_v11 = vsel %vm346_vm0, %v1424_v8, %v1428_v55 }
 0x12b   : > { %1568 = vmatprep.mubr.f32.mxu0 %v1409_v3  ;;  %1578 = vmatprep.mubr.f32.mxu1 %v1417_v20 }
 0x12e   : > { %1569 = vmatmul.mubr.f32.gmra.mxu0 %v1407_v35  ;;  %1579 = vmatmul.mubr.f32.gmra.mxu1 %v1415_v6 }
 0x12f   : > { %1583 = vmatprep.mubr.f32.mxu1 %v1421_v38 }
 0x132   : > { %1584 = vmatmul.mubr.f32.gmra.mxu1 %v1419_v5 }
 0x133   : > { %1588 = vmatprep.mubr.f32.mxu1 %v1425_v4 }
 0x136   : > { %1589 = vmatmul.mubr.f32.gmra.mxu1 %v1423_v31 }
 0x137   : > { %1593 = vmatprep.mubr.f32.mxu1 %v1429_v11 }
 0x13a   : > { %1594 = vmatmul.mubr.f32.gmra.mxu1 %v1427_v14 }
 0x13b   : > { %1598 = vmatprep.mubr.f32.mxu1 %v1433_v16 }
 0x13e   : > { %1599 = vmatmul.mubr.f32.gmra.mxu1 %v1431_v17 }
 0x13f   : > { %1603 = vmatprep.mubr.f32.mxu1 %v1437_v21 }
 0x142   : > { %1604 = vmatmul.mubr.f32.gmra.mxu1 %v1435_v23 }
 0x143   : > { %1608 = vmatprep.mubr.f32.mxu1 %v1441_v25 }
 0x146   : > { %1609 = vmatmul.mubr.f32.gmra.mxu1 %v1439_v29 }
 0x147   : > { %1613 = vmatprep.mubr.f32.mxu1 %v1445_v32 }
 0x14a   : > { %1614 = vmatmul.mubr.f32.gmra.mxu1 %v1443_v39 }
 0x14b   : > { %1618 = vmatprep.mubr.f32.mxu1 %v1449_v26 }
 0x14e   : > { %1619 = vmatmul.mubr.f32.gmra.mxu1 %v1447_v37 }
 0x14f   : > { %1623 = vmatprep.mubr.f32.mxu1 %v1453_v41 }
 0x152   : > { %1624 = vmatmul.mubr.f32.gmra.mxu1 %v1451_v42 }
 0x153   : > { %1628 = vmatprep.mubr.f32.mxu1 %v1457_v47 }
 0x156   : > { %1629 = vmatmul.mubr.f32.gmra.mxu1 %v1455_v27 }
 0x157   : > { %1633 = vmatprep.mubr.f32.mxu1 %v1461_v10 }
 0x15a   : > { %1634 = vmatmul.mubr.f32.gmra.mxu1 %v1459_v28 }
 0x1a6   : > { %v2908_v61 = vpop.f32.mrf.mxu0 }
 0x1a8   : > { %v2910_v1 = vpop.f32.mrf.mxu0 }
 0x1aa   : > { %v2912_v48 = vpop.f32.mrf.mxu0  ;;  %v1918_v52 = vpop.f32.mrf.mxu1 }
 0x1ac   : > { %v2914_v53 = vpop.f32.mrf.mxu0  ;;  %v1919_v54 = vpop.f32.mrf.mxu1 }
 0x1ad   : > { %v1920_v10 = vadd.f32 %v1919_v54, %v1918_v52  ;;  %v3031_v52 = vld [vmem:[%s3171_s5] ss:$0 sm:$0xff] }
 0x1ae   : > { %v2916_v15 = vpop.f32.mrf.mxu0  ;;  %v1921_v58 = vpop.f32.mrf.mxu1 }
 0x1b0   : > { %v2918_v57 = vpop.f32.mrf.mxu0  ;;  %v1922_v62 = vpop.f32.mrf.mxu1 }
 0x1b2   : > { %v2920_v56 = vpop.f32.mrf.mxu0  ;;  %v2922_v40 = vpop.f32.mrf.mxu1 }
 0x1b4   : > { %v2924_v49 = vpop.f32.mrf.mxu0  ;;  %v2926_v63 = vpop.f32.mrf.mxu1 }
 0x1b6   : > { %v2928_v2 = vpop.f32.mrf.mxu0  ;;  %v1927_v3 = vpop.f32.mrf.mxu1 }
 0x1b8   : > { %v2930_v20 = vpop.f32.mrf.mxu0  ;;  %v1928_v7 = vpop.f32.mrf.mxu1 }
 0x1ba   : > { %v2932_v35 = vpop.f32.mrf.mxu0  ;;  %v2934_v6 = vpop.f32.mrf.mxu1 }
 0x1bc   : > { %v2936_v8 = vpop.f32.mrf.mxu0  ;;  %v2938_v38 = vpop.f32.mrf.mxu1 }
 0x1be   : > { %v2940_v9 = vpop.f32.mrf.mxu0  ;;  %v2942_v5 = vpop.f32.mrf.mxu1 }
 0x1c0   : > { %v2944_v55 = vpop.f32.mrf.mxu0  ;;  %v2946_v4 = vpop.f32.mrf.mxu1 }
 0x1c2   : > { %v2948_v24 = vpop.f32.mrf.mxu0  ;;  %v2950_v31 = vpop.f32.mrf.mxu1 }
 0x1c4   : > { %v2952_v60 = vpop.f32.mrf.mxu0  ;;  %v2954_v11 = vpop.f32.mrf.mxu1 }
 0x1c6   : > { %v2956_v50 = vpop.f32.mrf.mxu0  ;;  %v2958_v14 = vpop.f32.mrf.mxu1 }
 0x1c8   : > { %v2960_v18 = vpop.f32.mrf.mxu0  ;;  %v2962_v16 = vpop.f32.mrf.mxu1 }
 0x1ca   : > { %v2964_v13 = vpop.f32.mrf.mxu0  ;;  %v2966_v17 = vpop.f32.mrf.mxu1 }
 0x1cc   : > { %v2968_v45 = vpop.f32.mrf.mxu0  ;;  %v2970_v21 = vpop.f32.mrf.mxu1 }
 0x1ce   : > { %v2972_v34 = vpop.f32.mrf.mxu0  ;;  %v2974_v23 = vpop.f32.mrf.mxu1 }
 0x1d0   : > { %v2976_v12 = vpop.f32.mrf.mxu0  ;;  %v2978_v25 = vpop.f32.mrf.mxu1 }
 0x1d2   : > { %v2980_v59 = vpop.f32.mrf.mxu0  ;;  %v2982_v29 = vpop.f32.mrf.mxu1 }
 0x1d4   : > { %v2984_v36 = vpop.f32.mrf.mxu0  ;;  %v2986_v32 = vpop.f32.mrf.mxu1 }
 0x1d6   : > { %v2988_v19 = vpop.f32.mrf.mxu0  ;;  %v2990_v39 = vpop.f32.mrf.mxu1 }
 0x1d8   : > { %v2992_v0 = vpop.f32.mrf.mxu0  ;;  %v2994_v26 = vpop.f32.mrf.mxu1 }
 0x1d9   : > { %3174 = vst [vmem:[#allocation3_spill] sm:$0xff] %v2992_v0  ;;  %v1929_v0 = vadd.f32 %v1928_v7, %v1927_v3 }
 0x1da   : > { %v2996_v51 = vpop.f32.mrf.mxu0  ;;  %v2998_v37 = vpop.f32.mrf.mxu1 }
 0x1db   : > { %3175 = vst [vmem:[#allocation4_spill] sm:$0xff] %v2996_v51  ;;  %v1923_v51 = vadd.f32 %v1922_v62, %v1921_v58  ;;  %v1926_v62 = vadd.f32 %v2926_v63, %v2922_v40 }
 0x1dc   : > { %v3000_v30 = vpop.f32.mrf.mxu0  ;;  %v3002_v41 = vpop.f32.mrf.mxu1 }
 0x1dd   : > { %3176 = vst [vmem:[#allocation5_spill] sm:$0xff] %v3000_v30 }
 0x1de   : > { %v3004_v33 = vpop.f32.mrf.mxu0  ;;  %v3006_v22 = vpop.f32.mrf.mxu1 }
 0x1df   : > { %3177 = vst [vmem:[#allocation6_spill] sm:$0xff] %v3004_v33  ;;  %3178 = vst [vmem:[#allocation7_spill] sm:$0xff] %v3006_v22  ;;  %v2000_v33 = vadd.f32 %v2910_v1, %v2908_v61  ;;  %v2009_v61 = vadd.f32 %v2924_v49, %v2920_v56  ;;  %v2006_v56 = vadd.f32 %v2918_v57, %v2916_v15 }
 0x1e0   : > { %v3008_v42 = vpop.f32.mrf.mxu0  ;;  %v3010_v47 = vpop.f32.mrf.mxu1  ;;  %v1932_v49 = vadd.f32 %v2938_v38, %v2934_v6  ;;  %v2012_v15 = vadd.f32 %v2930_v20, %v2928_v2  ;;  %v1935_v57 = vadd.f32 %v2946_v4, %v2942_v5 }
 0x1e1   : > { %3179 = vst [vmem:[#allocation8_spill] sm:$0xff] %v3008_v42  ;;  %3180 = vst [vmem:[#allocation9_spill] sm:$0xff] %v3010_v47  ;;  %v1277_v47 = vadd.f32 %v2000_v33, %v1920_v10  ;;  %v1292_v7 = vadd.f32 %v2009_v61, %v1929_v0  ;;  %v1287_v0 = vadd.f32 %v2006_v56, %v1926_v62 }
 0x1e2   : > { %v3012_v43 = vpop.f32.mrf.mxu0  ;;  %v3014_v44 = vpop.f32.mrf.mxu1  ;;  %v2015_v61 = vadd.f32 %v2936_v8, %v2932_v35 }
 0x1e3   : > { %3181 = vst [vmem:[#allocation10_spill] sm:$0xff] %v3012_v43  ;;  %3182 = vst [vmem:[#allocation11_spill] sm:$0xff] %v3014_v44  ;;  %v2003_v44 = vadd.f32 %v2914_v53, %v2912_v48  ;;  %v3040_v48 = vld [vmem:[%s3172_s6] ss:$0 sm:$0xff] }
 0x1e4   : > { %v3016_v27 = vpop.f32.mrf.mxu0  ;;  %v3018_v46 = vpop.f32.mrf.mxu1  ;;  %v1302_v4 = vadd.f32 %v2015_v61, %v1935_v57  ;;  %v2021_v57 = vadd.f32 %v2952_v60, %v2948_v24  ;;  %v2024_v24 = vadd.f32 %v2960_v18, %v2956_v50  ;;  %v2027_v50 = vadd.f32 %v2968_v45, %v2964_v13 }
 0x1e5   : > { %3183 = vst [vmem:[#allocation12_spill] sm:$0xff] %v3016_v27  ;;  %v1282_v58 = vadd.f32 %v2003_v44, %v1923_v51 }
 0x1e6   : > { %v2078_v28 = vpop.f32.mrf.mxu0  ;;  %v3020_v30 = vpop.f32.mrf.mxu1 }
 0x1e8   : > { %v2079_v22 = vpop.f32.mrf.mxu0  ;;  %v3024_v42 = vpop.f32.mrf.mxu1 }
 0x1e9   : > { %v2080_v43 = vadd.f32 %v2079_v22, %v2078_v28 }
 0x1ea   : > { %v2081_v54 = vpop.f32.mrf.mxu0  ;;  %v2087_v27 = vpop.f32.mrf.mxu1 }
 0x1eb   : > { %v1639_v1 = vadd.f32 %v2080_v43, %v1277_v47 }
 0x1ec   : > { %v2082_v53 = vpop.f32.mrf.mxu0  ;;  %v2088_v3 = vpop.f32.mrf.mxu1 }
 0x1ed   : > { %v1662_v33 = vmul.f32 %v3031_v52, %v1639_v1  ;;  %v2083_v22 = vadd.f32 %v2082_v53, %v2081_v54  ;;  %v2089_v10 = vadd.f32 %v2088_v3, %v2087_v27  ;;  %v1297_v1 = vadd.f32 %v2012_v15, %v1932_v49 }
 0x1ee   : > { %v2084_v51 = vpop.f32.mrf.mxu0  ;;  %v2090_v40 = vpop.f32.mrf.mxu1  ;;  %v1938_v53 = vadd.f32 %v2954_v11, %v2950_v31 }
 0x1ef   : > { %v1685_v63 = vadd.f32 %v3040_v48, %v1662_v33  ;;  %v1640_v47 = vadd.f32 %v2083_v22, %v1282_v58  ;;  %v1642_v43 = vadd.f32 %v2089_v10, %v1292_v7  ;;  %v2018_v10 = vadd.f32 %v2944_v55, %v2940_v9 }
 0x1f0   : > { %v2085_v6 = vpop.f32.mrf.mxu0  ;;  %v2091_v38 = vpop.f32.mrf.mxu1 }
 0x1f1   : > { %v1701_v44 = vmax.f32 %v1685_v63, 0.0  ;;  %v1663_v27 = vmul.f32 %v3031_v52, %v1640_v47  ;;  %v1665_v28 = vmul.f32 %v3031_v52, %v1642_v43  ;;  %v2086_v54 = vadd.f32 %v2085_v6, %v2084_v51 }
 0x1f2   : > { %v2092_v58 = vadd.f32 %v2091_v38, %v2090_v40  ;;  %v2093_v62 = vpop.f32.mrf.mxu1  ;;  %v1307_v51 = vadd.f32 %v2018_v10, %v1938_v53  ;;  %v1941_v47 = vadd.f32 %v2962_v16, %v2958_v14  ;;  %v1950_v53 = vadd.f32 %v2986_v32, %v2982_v29 }
 0x1f3   : > { %1718 = vst.msk [vmem:[%s3053_s20] sm:$0xff] %vm1717_vm4, %v1701_v44  ;;  %v1686_v2 = vadd.f32 %v3040_v48, %v1663_v27  ;;  %v1688_v20 = vadd.f32 %v3040_v48, %v1665_v28  ;;  %v1641_v5 = vadd.f32 %v2086_v54, %v1287_v0  ;;  %v1944_v44 = vadd.f32 %v2970_v21, %v2966_v17 }
 0x1f4   : > { %v1643_v3 = vadd.f32 %v2092_v58, %v1297_v1  ;;  %v2094_v7 = vpop.f32.mrf.mxu1  ;;  %v1312_v16 = vadd.f32 %v2021_v57, %v1941_v47  ;;  %v1947_v21 = vadd.f32 %v2978_v25, %v2974_v23  ;;  %v1953_v29 = vadd.f32 %v2994_v26, %v2990_v39  ;;  %v3185_v57 = vld [vmem:[#allocation7_spill] sm:$0xff] }
 0x1f5   : > { %v1702_v33 = vmax.f32 %v1686_v2, 0.0  ;;  %v1704_v35 = vmax.f32 %v1688_v20, 0.0  ;;  %v1664_v8 = vmul.f32 %v3031_v52, %v1641_v5  ;;  %v2095_v22 = vadd.f32 %v2094_v7, %v2093_v62 }
 0x1f6   : > { %v1666_v56 = vmul.f32 %v3031_v52, %v1643_v3  ;;  %v2096_v49 = vpop.f32.mrf.mxu1  ;;  %v1317_v58 = vadd.f32 %v2024_v24, %v1944_v44  ;;  %v1322_v7 = vadd.f32 %v2027_v50, %v1947_v21  ;;  %v3189_v24 = vld [vmem:[#allocation11_spill] sm:$0xff] }
 0x1f7   : > { %1719 = vst.msk [vmem:[%s3053_s20 + $0x8] sm:$0xff] %vm1717_vm4, %v1702_v33  ;;  %1721 = vst.msk [vmem:[%s3053_s20 + $0x18] sm:$0xff] %vm1717_vm4, %v1704_v35  ;;  %v1687_v31 = vadd.f32 %v3040_v48, %v1664_v8  ;;  %v1644_v11 = vadd.f32 %v2095_v22, %v1302_v4  ;;  %v2030_v35 = vadd.f32 %v2976_v12, %v2972_v34 }
 0x1f8   : > { %v1689_v40 = vadd.f32 %v3040_v48, %v1666_v56  ;;  %v2097_v63 = vpop.f32.mrf.mxu1  ;;  %v2033_v34 = vadd.f32 %v2984_v36, %v2980_v59 }
 0x1f9   : > { %v1703_v9 = vmax.f32 %v1687_v31, 0.0  ;;  %v1667_v55 = vmul.f32 %v3031_v52, %v1644_v11  ;;  %v2098_v43 = vadd.f32 %v2097_v63, %v2096_v49  ;;  %v1327_v22 = vadd.f32 %v2030_v35, %v1950_v53  ;;  %v3193_v35 = vld [vmem:[#allocation12_spill] sm:$0xff] }
 0x1fa   : > { %v1705_v0 = vmax.f32 %v1689_v40, 0.0  ;;  %v2099_v15 = vpop.f32.mrf.mxu1  ;;  %v1332_v63 = vadd.f32 %v2033_v34, %v1953_v29 }
 0x1fb   : > { %1720 = vst.msk [vmem:[%s3053_s20 + $0x10] sm:$0xff] %vm1717_vm4, %v1703_v9  ;;  %v1690_v6 = vadd.f32 %v3040_v48, %v1667_v55  ;;  %v1645_v38 = vadd.f32 %v2098_v43, %v1307_v51  ;;  %v1956_v51 = vadd.f32 %v3002_v41, %v2998_v37  ;;  %v3184_v9 = vld [vmem:[#allocation3_spill] sm:$0xff]  ;;  %v3186_v37 = vld [vmem:[#allocation9_spill] sm:$0xff] }
 0x1fc   : > { %1722 = vst.msk [vmem:[%s3053_s20 + $0x20] sm:$0xff] %vm1717_vm4, %v1705_v0  ;;  %v2100_v14 = vpop.f32.mrf.mxu1  ;;  %v2036_v55 = vadd.f32 %v3184_v9, %v2988_v19  ;;  %v1959_v41 = vadd.f32 %v3186_v37, %v3185_v57 }
 0x1fd   : > { %v1706_v27 = vmax.f32 %v1690_v6, 0.0  ;;  %v1668_v28 = vmul.f32 %v3031_v52, %v1645_v38  ;;  %v2101_v54 = vadd.f32 %v2100_v14, %v2099_v15 }
 0x1fe   : > { %v2102_v60 = vpop.f32.mrf.mxu1  ;;  %v1337_v0 = vadd.f32 %v2036_v55, %v1956_v51 }
 0x1ff   : > { %1723 = vst.msk [vmem:[%s3053_s20 + $0x28] sm:$0xff] %vm1717_vm4, %v1706_v27  ;;  %v1691_v61 = vadd.f32 %v3040_v48, %v1668_v28  ;;  %v1646_v1 = vadd.f32 %v2101_v54, %v1312_v16  ;;  %v3187_v16 = vld [vmem:[#allocation4_spill] sm:$0xff]  ;;  %v3188_v27 = vld [vmem:[#allocation5_spill] sm:$0xff] }
 0x200   : > { %v2103_v17 = vpop.f32.mrf.mxu1  ;;  %v2039_v19 = vadd.f32 %v3188_v27, %v3187_v16 }
 0x201   : > { %v1707_v62 = vmax.f32 %v1691_v61, 0.0  ;;  %v1669_v2 = vmul.f32 %v3031_v52, %v1646_v1  ;;  %v2104_v20 = vadd.f32 %v2103_v17, %v2102_v60  ;;  %v1962_v60 = vadd.f32 %v3018_v46, %v3189_v24 }
 0x202   : > { %v2105_v5 = vpop.f32.mrf.mxu1  ;;  %v1342_v1 = vadd.f32 %v2039_v19, %v1959_v41  ;;  %v1965_v46 = vadd.f32 %v3024_v42, %v3020_v30 }
 0x203   : > { %1724 = vst.msk [vmem:[%s3053_s20 + $0x30] sm:$0xff] %vm1717_vm4, %v1707_v62  ;;  %v1692_v18 = vadd.f32 %v3040_v48, %v1669_v2  ;;  %v1647_v4 = vadd.f32 %v2104_v20, %v1317_v58  ;;  %v3190_v62 = vld [vmem:[#allocation6_spill] sm:$0xff]  ;;  %v3191_v2 = vld [vmem:[#allocation8_spill] sm:$0xff] }
 0x204   : > { %v2106_v3 = vpop.f32.mrf.mxu1  ;;  %v2042_v20 = vadd.f32 %v3191_v2, %v3190_v62 }
 0x205   : > { %v1708_v23 = vmax.f32 %v1692_v18, 0.0  ;;  %v1670_v25 = vmul.f32 %v3031_v52, %v1647_v4  ;;  %v2107_v33 = vadd.f32 %v2106_v3, %v2105_v5 }
 0x206   : > { %v2108_v8 = vpop.f32.mrf.mxu1  ;;  %v1347_v4 = vadd.f32 %v2042_v20, %v1962_v60 }
 0x207   : > { %1725 = vst.msk [vmem:[%s3053_s20 + $0x38] sm:$0xff] %vm1717_vm4, %v1708_v23  ;;  %v1693_v13 = vadd.f32 %v3040_v48, %v1670_v25  ;;  %v1648_v45 = vadd.f32 %v2107_v33, %v1322_v7  ;;  %v3192_v33 = vld [vmem:[#allocation10_spill] sm:$0xff] }
 0x208   : > { %v2109_v10 = vpop.f32.mrf.mxu1 }
 0x209   : > { %v1709_v32 = vmax.f32 %v1693_v13, 0.0  ;;  %v1671_v56 = vmul.f32 %v3031_v52, %v1648_v45  ;;  %v2110_v49 = vadd.f32 %v2109_v10, %v2108_v8  ;;  %v2045_v8 = vadd.f32 %v3193_v35, %v3192_v33 }
 0x20a   : > { %v2111_v31 = vpop.f32.mrf.mxu1 }
 0x20b   : > { %1726 = vst.msk [vmem:[%s3053_s20 + $0x40] sm:$0xff] %vm1717_vm4, %v1709_v32  ;;  %v1694_v12 = vadd.f32 %v3040_v48, %v1671_v56  ;;  %v1649_v11 = vadd.f32 %v2110_v49, %v1327_v22  ;;  %v1352_v10 = vadd.f32 %v2045_v8, %v1965_v46 }
 0x20c   : > { %v2112_v40 = vpop.f32.mrf.mxu1 }
 0x20d   : > { %v1710_v39 = vmax.f32 %v1694_v12, 0.0  ;;  %v1672_v26 = vmul.f32 %v3031_v52, %v1649_v11  ;;  %v2113_v47 = vadd.f32 %v2112_v40, %v2111_v31 }
 0x20e   : > { %v2114_v43 = vpop.f32.mrf.mxu1 }
 0x20f   : > { %1727 = vst.msk [vmem:[%s3053_s20 + $0x48] sm:$0xff] %vm1717_vm4, %v1710_v39  ;;  %v1695_v59 = vadd.f32 %v3040_v48, %v1672_v26  ;;  %v1650_v36 = vadd.f32 %v2113_v47, %v1332_v63 }
 0x210   : > { %v2115_v15 = vpop.f32.mrf.mxu1 }
 0x211   : > { %v1711_v6 = vmax.f32 %v1695_v59, 0.0  ;;  %v1673_v38 = vmul.f32 %v3031_v52, %v1650_v36  ;;  %v2116_v44 = vadd.f32 %v2115_v15, %v2114_v43 }
 0x212   : > { %v2117_v14 = vpop.f32.mrf.mxu1 }
 0x213   : > { %1728 = vst.msk [vmem:[%s3053_s20 + $0x50] sm:$0xff] %vm1717_vm4, %v1711_v6  ;;  %v1696_v28 = vadd.f32 %v3040_v48, %v1673_v38  ;;  %v1651_v54 = vadd.f32 %v2116_v44, %v1337_v0 }
 0x214   : > { %v2118_v61 = vpop.f32.mrf.mxu1 }
 0x215   : > { %v1712_v58 = vmax.f32 %v1696_v28, 0.0  ;;  %v1674_v17 = vmul.f32 %v3031_v52, %v1651_v54  ;;  %v2119_v21 = vadd.f32 %v2118_v61, %v2117_v14 }
 0x216   : > { %v2120_v5 = vpop.f32.mrf.mxu1 }
 0x217   : > { %1729 = vst.msk [vmem:[%s3053_s20 + $0x58] sm:$0xff] %vm1717_vm4, %v1712_v58  ;;  %v1697_v50 = vadd.f32 %v3040_v48, %v1674_v17  ;;  %v1652_v18 = vadd.f32 %v2119_v21, %v1342_v1 }
 0x218   : > { %v2121_v53 = vpop.f32.mrf.mxu1 }
 0x219   : > { %v1713_v3 = vmax.f32 %v1697_v50, 0.0  ;;  %v1675_v7 = vmul.f32 %v3031_v52, %v1652_v18  ;;  %v2122_v23 = vadd.f32 %v2121_v53, %v2120_v5 }
 0x21a   : > { %v2123_v25 = vpop.f32.mrf.mxu1 }
 0x21b   : > { %1730 = vst.msk [vmem:[%s3053_s20 + $0x60] sm:$0xff] %vm1717_vm4, %v1713_v3  ;;  %v1698_v13 = vadd.f32 %v3040_v48, %v1675_v7  ;;  %v1653_v45 = vadd.f32 %v2122_v23, %v1347_v4 }
 0x21c   : > { %v2124_v22 = vpop.f32.mrf.mxu1 }
 0x21d   : > { %v1714_v29 = vmax.f32 %v1698_v13, 0.0  ;;  %v1676_v30 = vmul.f32 %v3031_v52, %v1653_v45  ;;  %v2125_v42 = vadd.f32 %v2124_v22, %v2123_v25 }
 0x21f   : > { %1731 = vst.msk [vmem:[%s3053_s20 + $0x68] sm:$0xff] %vm1717_vm4, %v1714_v29  ;;  %v1699_v32 = vadd.f32 %v3040_v48, %v1676_v30  ;;  %v1654_v56 = vadd.f32 %v2125_v42, %v1352_v10 }
 0x221   : > { %v1715_v49 = vmax.f32 %v1699_v32, 0.0  ;;  %v1677_v31 = vmul.f32 %v3031_v52, %v1654_v56 }
 0x223   : > { %1732 = vst.msk [vmem:[%s3053_s20 + $0x70] sm:$0xff] %vm1717_vm4, %v1715_v49  ;;  %v1700_v34 = vadd.f32 %v3040_v48, %v1677_v31 }
 0x225   : > { %v1716_v12 = vmax.f32 %v1700_v34, 0.0 }
 0x227   : > { %1733 = vst.msk [vmem:[%s3053_s20 + $0x78] sm:$0xff] %vm1717_vm4, %v1716_v12 }
 0x228 PF: > { %s17_s24 = sadd.s32 1, %s2173_s24  }
 0x229   : > { %p14_p4 = scmp.ge.s32.totalorder %s17_s24, 4  }
 0x22b   :  { %16 = sbr.rel (!%p14_p4) target bundleno = 1 (0x1), region = 80 }

</bundles_post_ra>
